<compile_context>
chip_gen: v6e
topology: v6e:2x2x1
jax: 0.10.0
libtpu: 0.0.40
codegen_flags: <defaults>
</compile_context>

<pallas_src>
import functools

import jax
import jax.numpy as jnp
from jax.experimental import pallas as pl
from jax.experimental.pallas import tpu as pltpu

NEG_SLOPE_ATT = 0.2    # HypergraphConv leaky_relu negative_slope
NEG_SLOPE_FFN = 0.01   # nn.LeakyReLU default
LN_EPS = 1e-5          # nn.LayerNorm default


# ----------------------------------------------------------------------------
# Fused encoder kernel: grid axis = layer index; x / xsum resident in VMEM.
# ----------------------------------------------------------------------------
def _encoder_kernel(x0_ref, m_ref, binv_ref, dinv_ref,
                    wlin_ref, wfold_ref, bias_ref,
                    ln1g_ref, ln1b_ref, w1_ref, b1_ref, w2_ref, b2_ref,
                    ln2g_ref, ln2b_ref,
                    out_ref,
                    x_sc, xsum_sc,
                    *, n_heads, n_layers):
    f32 = jnp.float32
    bf16 = jnp.bfloat16
    H = n_heads
    layer = pl.program_id(0)

    @pl.when(layer == 0)
    def _():
        x_sc[...] = x0_ref[...]
        xsum_sc[...] = x0_ref[...]

    x = x_sc[...]                               # (N, D) f32
    N, D = x.shape
    F = D                                       # concat=False, out == in channels
    xb = x.astype(bf16)

    m_scaled = m_ref[...]                       # (N, Ep) bf16, B^-1 folded in columns
    binv_row = binv_ref[...]                    # (1, Ep) f32, exact 1/edge_degree
    dinv_col = dinv_ref[...]                    # (N, 1) f32, exact 1/node_degree / H
    mask = m_scaled > 0                         # (N, Ep); padded edges are all-zero

    # All head projections with ONE wide MXU push: (N,D)x(D,H*F).
    xh_all = jnp.dot(xb, wlin_ref[...], preferred_element_type=f32)     # (N, H*F)

    # Node- and edge-side attention logits for ALL heads (att folded into w_lin):
    #   fold[:, :H]  -> a_x[v,h] = <xh[v,h,:], att1[h,:]>
    #   fold[:, H:]  -> z[v,h]   = <(x @ Wlin_h)[v,:], att2[h,:]>
    fold = jnp.dot(xb, wfold_ref[...], preferred_element_type=f32)      # (N, 2H)
    a_x_all = fold[:, :H]                                               # (N, H)
    # a_e[h,e] = Binv[e] * sum_v M[v,e] * z[v,h]   (omega matmul eliminated)
    a_e_all = jax.lax.dot_general(
        fold[:, H:].astype(bf16), m_scaled,
        (((0,), (0,)), ((), ())), preferred_element_type=f32)           # (H, Ep)

    acc = jnp.zeros((N, F), f32)
    # H is small; static unroll is fine here.  At realistic node tiles switch to
    # lax.fori_loop(..., unroll=True) to bound live ranges of the (N,Ep) temps.
    for h in range(H):
        xh_h = xh_all[:, h * F:(h + 1) * F]                             # (N, F)
        a_x = a_x_all[:, h:h + 1]                                       # (N, 1)
        a_e = a_e_all[h:h + 1, :]                                       # (1, Ep)

        logits = a_x + a_e                                              # (N, Ep)
        logits = jnp.where(logits >= 0.0, logits, NEG_SLOPE_ATT * logits)

        # masked softmax over hyperedges incident to each node (f32 path).
        # NOTE: assumes every node has >=1 incident edge (guaranteed below);
        # otherwise mmax=-1e30 would overflow exp before the mask select.
        masked = jnp.where(mask, logits, -1e30)
        mmax = jnp.max(masked, axis=1, keepdims=True)
        ex = jnp.where(mask, jnp.exp(logits - mmax), 0.0)
        denom = jnp.sum(ex, axis=1, keepdims=True) + 1e-16
        alpha = ex * pl.reciprocal(denom, approx=True)                  # (N, Ep)

        alpha_b = alpha.astype(bf16)
        alpha_be_b = (alpha * binv_row).astype(bf16)                    # B^-1 folded
        xh_hb = xh_h.astype(bf16)

        # node -> edge: edge_out[e,f] = B[e] * sum_v alpha[v,e] * xh[v,f]
        edge_out = jax.lax.dot_general(
            alpha_be_b, xh_hb, (((0,), (0,)), ((), ())),
            preferred_element_type=f32)                                 # (Ep, F)
        # edge -> node: node_out[v,f] = sum_e alpha[v,e] * edge_out[e,f]
        node_out = jnp.dot(alpha_b, edge_out.astype(bf16),
                           preferred_element_type=f32)                  # (N, F)
        acc = acc + node_out

    # D^-1 (with 1/H folded at prep time) + bias
    conv = dinv_col * acc + bias_ref[...]                               # (N, D)

    # --- residual + LayerNorm 1 ----------------------------------------------
    h1 = x + conv
    mu1 = jnp.mean(h1, axis=-1, keepdims=True)
    var1 = jnp.mean((h1 - mu1) ** 2, axis=-1, keepdims=True)
    h1n = (h1 - mu1) * jax.lax.rsqrt(var1 + LN_EPS) * ln1g_ref[...] + ln1b_ref[...]

    # --- FFN: Linear -> Linear -> LeakyReLU (bf16 MXU, f32 accumulate) -------
    y = jnp.dot(h1n.astype(bf16), w1_ref[...], preferred_element_type=f32) + b1_ref[...]
    y = jnp.dot(y.astype(bf16), w2_ref[...], preferred_element_type=f32) + b2_ref[...]
    y = jnp.where(y >= 0.0, y, NEG_SLOPE_FFN * y)

    # --- residual + LayerNorm 2 ----------------------------------------------
    h2 = h1n + y
    mu2 = jnp.mean(h2, axis=-1, keepdims=True)
    var2 = jnp.mean((h2 - mu2) ** 2, axis=-1, keepdims=True)
    layer_out = (h2 - mu2) * jax.lax.rsqrt(var2 + LN_EPS) * ln2g_ref[...] + ln2b_ref[...]

    # --- encoder residual + running sum (stay in VMEM across layers) ---------
    x_next = x + layer_out
    xsum_next = xsum_sc[...] + x_next
    x_sc[...] = x_next
    xsum_sc[...] = xsum_next

    @pl.when(layer == n_layers - 1)
    def _():
        out_ref[...] = xsum_next * (1.0 / (n_layers + 1))


# ----------------------------------------------------------------------------
# Wrapper: parameter / incidence preprocessing and the single pallas_call
# ----------------------------------------------------------------------------
def _prep_layer_params(p):
    """Weight-only preprocessing done once outside the kernel."""
    D, HF = p['w_lin'].shape
    H = p['att'].shape[0]
    F = HF // H
    w3 = p['w_lin'].reshape(D, H, F)
    att1 = p['att'][:, :F]                                   # node-side att
    att2 = p['att'][:, F:]                                   # edge-side att
    # fold both attention vectors into w_lin:  wfold = [att1-fold | att2-fold]
    wfold = jnp.concatenate(
        [jnp.einsum('dhf,hf->dh', w3, att1),
         jnp.einsum('dhf,hf->dh', w3, att2)], axis=1).astype(jnp.bfloat16)   # (D, 2H)
    return dict(
        wlin=p['w_lin'].astype(jnp.bfloat16),                # (D, H*F)
        wfold=wfold,                                         # (D, 2H)
        bias=p['bias'].astype(jnp.float32),
        ln1_g=p['ln1_g'].astype(jnp.float32), ln1_b=p['ln1_b'].astype(jnp.float32),
        w1=p['w1'].astype(jnp.bfloat16), b1=p['b1'].astype(jnp.float32),
        w2=p['w2'].astype(jnp.bfloat16), b2=p['b2'].astype(jnp.float32),
        ln2_g=p['ln2_g'].astype(jnp.float32), ln2_b=p['ln2_b'].astype(jnp.float32),
    )


def _stack_params(prepped):
    """Stack per-layer prepped params into (L, ...) arrays."""
    return {k: jnp.stack([pp[k] for pp in prepped], axis=0) for k in prepped[0]}


def _prep_incidence(M, n_heads):
    """Layer-invariant incidence preprocessing (exact reciprocals, lane padding)."""
    N, E = M.shape
    Ep = 128 * pl.cdiv(E, 128)                               # lane-dense edge axis
    edge_deg = jnp.sum(M, axis=0)                            # (E,)
    node_deg = jnp.sum(M, axis=1)                            # (N,)
    binv = jnp.where(edge_deg > 0, 1.0 / edge_deg, 0.0)      # exact
    dinv = jnp.where(node_deg > 0, 1.0 / node_deg, 0.0) / float(n_heads)
    Mp = jnp.pad(M, ((0, 0), (0, Ep - E)))                   # padded edges: deg 0
    binv_row = jnp.pad(binv.reshape(1, E), ((0, 0), (0, Ep - E)))
    m_scaled = (Mp * binv_row).astype(jnp.bfloat16)          # B^-1 folded into columns
    dinv_col = dinv.reshape(N, 1).astype(jnp.float32)
    return m_scaled, binv_row.astype(jnp.float32), dinv_col


def encoder_forward_pallas(x, M, stacked, n_heads, n_layers):
    N, D = x.shape
    m_scaled, binv_row, dinv_col = _prep_incidence(M, n_heads)
    Ep = m_scaled.shape[1]
    HF = stacked['wlin'].shape[2]
    H2 = stacked['wfold'].shape[2]

    def full2(shape):
        return pl.BlockSpec(shape, lambda l: (0, 0))

    def layer3(d1, d2):
        return pl.BlockSpec((None, d1, d2), lambda l: (l, 0, 0))

    in_specs = [
        full2((N, D)),            # x0
        full2((N, Ep)),           # m_scaled
        full2((1, Ep)),           # binv_row
        full2((N, 1)),            # dinv_col
        layer3(D, HF),            # wlin
        layer3(D, H2),            # wfold
        layer3(1, D),             # bias
        layer3(1, D), layer3(1, D),   # ln1 g/b
        layer3(D, D), layer3(1, D),   # ffn w1/b1
        layer3(D, D), layer3(1, D),   # ffn w2/b2
        layer3(1, D), layer3(1, D),   # ln2 g/b
    ]
    args = (x, m_scaled, binv_row, dinv_col,
            stacked['wlin'], stacked['wfold'], stacked['bias'],
            stacked['ln1_g'], stacked['ln1_b'],
            stacked['w1'], stacked['b1'], stacked['w2'], stacked['b2'],
            stacked['ln2_g'], stacked['ln2_b'])

    H = n_heads
    flops = n_layers * 2 * (N * D * HF + N * D * 2 * H + H * N * Ep
                            + 2 * H * N * Ep * D + 2 * N * D * D)
    transcendentals = n_layers * (H * N * Ep + 4 * N)
    bytes_accessed = (4 * (2 * N * D + Ep + N) + 2 * N * Ep
                      + n_layers * (2 * (D * HF + D * 2 * H + 2 * D * D) + 4 * 8 * D))

    out = pl.pallas_call(
        functools.partial(_encoder_kernel, n_heads=n_heads, n_layers=n_layers),
        out_shape=jax.ShapeDtypeStruct((N, D), jnp.float32),
        grid=(n_layers,),
        in_specs=in_specs,
        out_specs=pl.BlockSpec((N, D), lambda l: (0, 0)),
        scratch_shapes=[pltpu.VMEM((N, D), jnp.float32),     # x_l
                        pltpu.VMEM((N, D), jnp.float32)],    # running sum
        compiler_params=pltpu.CompilerParams(
            dimension_semantics=("arbitrary",),               # layers are sequential
            vmem_limit_bytes=32 * 1024 * 1024),
        cost_estimate=pl.CostEstimate(flops=flops,
                                      transcendentals=transcendentals,
                                      bytes_accessed=bytes_accessed),
    )(*args)
    return out


# ----------------------------------------------------------------------------
# Pure-JAX f32 reference (same semantics) for the correctness check
# ----------------------------------------------------------------------------
def _ln(h, g, b):
    mu = jnp.mean(h, axis=-1, keepdims=True)
    var = jnp.mean((h - mu) ** 2, axis=-1, keepdims=True)
    return (h - mu) * jax.lax.rsqrt(var + LN_EPS) * g + b


def hypergraph_layer_ref(x, M, p):
    N, D = x.shape
    E = M.shape[1]
    H = p['att'].shape[0]
    F = D
    deg_e = M.sum(0)
    omega = (M.T @ x) / deg_e[:, None]
    xh = (x @ p['w_lin']).reshape(N, H, F)
    eh = (omega @ p['w_lin']).reshape(E, H, F)
    a_x = (xh * p['att'][None, :, :F]).sum(-1)             # (N, H)
    a_e = (eh * p['att'][None, :, F:]).sum(-1)             # (E, H)
    logits = a_x[:, None, :] + a_e[None, :, :]             # (N, E, H)
    logits = jnp.where(logits >= 0, logits, NEG_SLOPE_ATT * logits)
    mask = (M > 0)[:, :, None]
    masked = jnp.where(mask, logits, -1e30)
    ex = jnp.where(mask, jnp.exp(logits - masked.max(1, keepdims=True)), 0.0)
    alpha = ex / (ex.sum(1, keepdims=True) + 1e-16)
    Binv = jnp.where(deg_e > 0, 1.0 / deg_e, 0.0)
    deg_n = M.sum(1)
    Dinv = jnp.where(deg_n > 0, 1.0 / deg_n, 0.0)
    ma = M[:, :, None] * alpha
    edge_out = Binv[:, None, None] * jnp.einsum('veh,vhf->ehf', ma, xh)
    node_out = Dinv[:, None, None] * jnp.einsum('veh,ehf->vhf', ma, edge_out)
    conv = node_out.mean(1) + p['bias'][0]
    h1n = _ln(x + conv, p['ln1_g'], p['ln1_b'])
    y = h1n @ p['w1'] + p['b1']
    y = y @ p['w2'] + p['b2']
    y = jnp.where(y >= 0, y, NEG_SLOPE_FFN * y)
    return _ln(h1n + y, p['ln2_g'], p['ln2_b'])


def encoder_forward_ref(x, M, params):
    outs = [x]
    for p in params:
        x = hypergraph_layer_ref(x, M, p) + x
        outs.append(x)
    return sum(outs) / float(len(params) + 1)


def init_params(key, D, H, n_layers):
    params = []
    scale = 1.0 / float(D) ** 0.5
    for _ in range(n_layers):
        key, k0, k1, k2, k3, k4, k5 = jax.random.split(key, 7)
        params.append(dict(
            w_lin=jax.random.normal(k0, (D, H * D), jnp.float32) * scale,
            att=jax.random.normal(k1, (H, 2 * D), jnp.float32) * scale,
            bias=jnp.zeros((1, D), jnp.float32),
            ln1_g=jnp.ones((1, D), jnp.float32),
            ln1_b=jnp.zeros((1, D), jnp.float32),
            w1=jax.random.normal(k2, (D, D), jnp.float32) * scale,
            b1=jax.random.normal(k3, (1, D), jnp.float32) * 0.1,
            w2=jax.random.normal(k4, (D, D), jnp.float32) * scale,
            b2=jax.random.normal(k5, (1, D), jnp.float32) * 0.1,
            ln2_g=jnp.ones((1, D), jnp.float32),
            ln2_b=jnp.zeros((1, D), jnp.float32),
        ))
    return params


if __name__ == "__main__":
    N, E, D, H, n_layers = 16, 8, 32, 4, 2   # nodes, hyperedges, embed dim, heads

    key = jax.random.PRNGKey(0)
    kx, km, kp = jax.random.split(key, 3)

    x = jax.random.normal(kx, (N, D), jnp.float32)

    # binary incidence matrix (stand-in for torch.sparse COO adj with 1.0 values);
    # guarantee every hyperedge and every node has at least one incidence.
    M = (jax.random.uniform(km, (N, E)) < 0.35).astype(jnp.float32)
    M = M.at[jnp.arange(N), jnp.arange(N) % E].set(1.0)
    M = M.at[jnp.arange(E) % N, jnp.arange(E)].set(1.0)

    params = init_params(kp, D, H, n_layers)
    stacked = _stack_params([_prep_layer_params(p) for p in params])

    run_pallas = jax.jit(functools.partial(encoder_forward_pallas,
                                           stacked=stacked, n_heads=H,
                                           n_layers=n_layers))
    run_ref = jax.jit(functools.partial(encoder_forward_ref, params=params))

    out = jax.block_until_ready(run_pallas(x, M))
    ref = jax.block_until_ready(run_ref(x, M))

    assert out.shape == (N, D)
    assert bool(jnp.all(jnp.isfinite(out)))
    max_diff = float(jnp.max(jnp.abs(out - ref)))
    # bf16 matmul operands + approx softmax reciprocal => looser tolerance vs f32 ref
    assert jnp.allclose(out, ref, rtol=5e-2, atol=5e-2), f"max abs diff {max_diff}"

    print("KERNEL_OK")
</pallas_src>

<mosaic_0001>
module attributes {stable_mosaic.version = 11 : i64} {
  func.func @_encoder_kernel(%arg0: i32, %arg1: memref<16x32xf32, #tpu.memory_space<vmem>>, %arg2: memref<16x128xbf16, #tpu.memory_space<vmem>>, %arg3: memref<1x128xf32, #tpu.memory_space<vmem>>, %arg4: memref<16x1xf32, #tpu.memory_space<vmem>>, %arg5: memref<1x32x128xbf16, #tpu.memory_space<vmem>>, %arg6: memref<1x32x8xbf16, #tpu.memory_space<vmem>>, %arg7: memref<1x1x32xf32, #tpu.memory_space<vmem>>, %arg8: memref<1x1x32xf32, #tpu.memory_space<vmem>>, %arg9: memref<1x1x32xf32, #tpu.memory_space<vmem>>, %arg10: memref<1x32x32xbf16, #tpu.memory_space<vmem>>, %arg11: memref<1x1x32xf32, #tpu.memory_space<vmem>>, %arg12: memref<1x32x32xbf16, #tpu.memory_space<vmem>>, %arg13: memref<1x1x32xf32, #tpu.memory_space<vmem>>, %arg14: memref<1x1x32xf32, #tpu.memory_space<vmem>>, %arg15: memref<1x1x32xf32, #tpu.memory_space<vmem>>, %arg16: memref<16x32xf32, #tpu.memory_space<vmem>>, %arg17: memref<16x32xf32, #tpu.memory_space<vmem>>, %arg18: memref<16x32xf32, #tpu.memory_space<vmem>>) attributes {dimension_semantics = [#tpu.dimension_semantics<arbitrary>], iteration_bounds = array<i64: 2>, scalar_prefetch = 0 : i64, scratch_operands = 2 : i64, tpu.core_type = #tpu.core_type<tc>, window_params = [{pipeline_mode = #tpu.pipeline_mode<synchronous>, transform_indices = @transform_0, window_bounds = array<i64: 16, 32>}, {pipeline_mode = #tpu.pipeline_mode<synchronous>, transform_indices = @transform_1, window_bounds = array<i64: 16, 128>}, {pipeline_mode = #tpu.pipeline_mode<synchronous>, transform_indices = @transform_2, window_bounds = array<i64: 1, 128>}, {pipeline_mode = #tpu.pipeline_mode<synchronous>, transform_indices = @transform_3, window_bounds = array<i64: 16, 1>}, {transform_indices = @transform_4, window_bounds = array<i64: 1, 32, 128>}, {transform_indices = @transform_5, window_bounds = array<i64: 1, 32, 8>}, {transform_indices = @transform_6, window_bounds = array<i64: 1, 1, 32>}, {transform_indices = @transform_7, window_bounds = array<i64: 1, 1, 32>}, {transform_indices = @transform_8, window_bounds = array<i64: 1, 1, 32>}, {transform_indices = @transform_9, window_bounds = array<i64: 1, 32, 32>}, {transform_indices = @transform_10, window_bounds = array<i64: 1, 1, 32>}, {transform_indices = @transform_11, window_bounds = array<i64: 1, 32, 32>}, {transform_indices = @transform_12, window_bounds = array<i64: 1, 1, 32>}, {transform_indices = @transform_13, window_bounds = array<i64: 1, 1, 32>}, {transform_indices = @transform_14, window_bounds = array<i64: 1, 1, 32>}, {pipeline_mode = #tpu.pipeline_mode<synchronous>, transform_indices = @transform_15, window_bounds = array<i64: 16, 32>}]} {
    %c0_i32 = arith.constant 0 : i32
    %0 = arith.cmpi eq, %arg0, %c0_i32 : i32
    %1 = arith.extui %0 : i1 to i32
    %c0_i32_0 = arith.constant 0 : i32
    %2 = arith.cmpi ne, %1, %c0_i32_0 : i32
    scf.if %2 {
      %c0_102 = arith.constant 0 : index
      %c0_103 = arith.constant 0 : index
      %254 = vector.load %arg1[%c0_102, %c0_103] : memref<16x32xf32, #tpu.memory_space<vmem>>, vector<16x32xf32>
      %c0_104 = arith.constant 0 : index
      %c0_105 = arith.constant 0 : index
      %255 = vector.load %arg17[%c0_104, %c0_105] : memref<16x32xf32, #tpu.memory_space<vmem>>, vector<16x32xf32>
      tpu.vector_store %arg17[%c0_104, %c0_105], %254 {strides = array<i32>} : memref<16x32xf32, #tpu.memory_space<vmem>>, vector<16x32xf32>,
      %c0_106 = arith.constant 0 : index
      %c0_107 = arith.constant 0 : index
      %256 = vector.load %arg1[%c0_106, %c0_107] : memref<16x32xf32, #tpu.memory_space<vmem>>, vector<16x32xf32>
      %c0_108 = arith.constant 0 : index
      %c0_109 = arith.constant 0 : index
      %257 = vector.load %arg18[%c0_108, %c0_109] : memref<16x32xf32, #tpu.memory_space<vmem>>, vector<16x32xf32>
      tpu.vector_store %arg18[%c0_108, %c0_109], %256 {strides = array<i32>} : memref<16x32xf32, #tpu.memory_space<vmem>>, vector<16x32xf32>,
    } else {
    }
    %c0 = arith.constant 0 : index
    %c0_1 = arith.constant 0 : index
    %3 = vector.load %arg17[%c0, %c0_1] : memref<16x32xf32, #tpu.memory_space<vmem>>, vector<16x32xf32>
    %4 = arith.truncf %3 : vector<16x32xf32> to vector<16x32xbf16>
    %c0_2 = arith.constant 0 : index
    %c0_3 = arith.constant 0 : index
    %5 = vector.load %arg2[%c0_2, %c0_3] : memref<16x128xbf16, #tpu.memory_space<vmem>>, vector<16x128xbf16>
    %c0_4 = arith.constant 0 : index
    %c0_5 = arith.constant 0 : index
    %6 = vector.load %arg3[%c0_4, %c0_5] : memref<1x128xf32, #tpu.memory_space<vmem>>, vector<1x128xf32>
    %c0_6 = arith.constant 0 : index
    %c0_7 = arith.constant 0 : index
    %7 = vector.load %arg4[%c0_6, %c0_7] : memref<16x1xf32, #tpu.memory_space<vmem>>, vector<16x1xf32>
    %cst = arith.constant 0.000000e+00 : bf16
    %8 = vector.broadcast %cst : bf16 to vector<16x128xbf16>
    %9 = arith.cmpf ogt, %5, %8 : vector<16x128xbf16>
    %c0_8 = arith.constant 0 : index
    %c0_9 = arith.constant 0 : index
    %c0_10 = arith.constant 0 : index
    %10 = vector.load %arg5[%c0_8, %c0_9, %c0_10] : memref<1x32x128xbf16, #tpu.memory_space<vmem>>, vector<1x32x128xbf16>
    %11 = vector.shape_cast %10 : vector<1x32x128xbf16> to vector<32x128xbf16>
    %cst_11 = arith.constant dense<0.000000e+00> : vector<16x128xf32>
    %12 = tpu.matmul %4, %11, %cst_11 {dimension_numbers = #tpu.dot_dimension_numbers<[1], [0], [0], [1], [0, 0, 1, 1], [], []>} : vector<16x32xbf16>, vector<32x128xbf16>, vector<16x128xf32> -> vector<16x128xf32>
    %c0_12 = arith.constant 0 : index
    %c0_13 = arith.constant 0 : index
    %c0_14 = arith.constant 0 : index
    %13 = vector.load %arg6[%c0_12, %c0_13, %c0_14] : memref<1x32x8xbf16, #tpu.memory_space<vmem>>, vector<1x32x8xbf16>
    %14 = vector.shape_cast %13 : vector<1x32x8xbf16> to vector<32x8xbf16>
    %cst_15 = arith.constant dense<0.000000e+00> : vector<16x8xf32>
    %15 = tpu.matmul %4, %14, %cst_15 {dimension_numbers = #tpu.dot_dimension_numbers<[1], [0], [0], [1], [0, 0, 1, 1], [], []>} : vector<16x32xbf16>, vector<32x8xbf16>, vector<16x8xf32> -> vector<16x8xf32>
    %16 = vector.extract_strided_slice %15 {offsets = [0, 0], sizes = [16, 4], strides = [1, 1]} : vector<16x8xf32> to vector<16x4xf32>
    %17 = vector.extract_strided_slice %15 {offsets = [0, 4], sizes = [16, 4], strides = [1, 1]} : vector<16x8xf32> to vector<16x4xf32>
    %18 = arith.truncf %17 : vector<16x4xf32> to vector<16x4xbf16>
    %cst_16 = arith.constant dense<0.000000e+00> : vector<4x128xf32>
    %19 = tpu.matmul %18, %5, %cst_16 {dimension_numbers = #tpu.dot_dimension_numbers<[0], [0], [1], [1], [0, 1, 1, 1], [], []>} : vector<16x4xbf16>, vector<16x128xbf16>, vector<4x128xf32> -> vector<4x128xf32>
    %cst_17 = arith.constant 0.000000e+00 : f32
    %20 = vector.broadcast %cst_17 : f32 to vector<16x32xf32>
    %21 = vector.extract_strided_slice %12 {offsets = [0, 0], sizes = [16, 32], strides = [1, 1]} : vector<16x128xf32> to vector<16x32xf32>
    %22 = vector.extract_strided_slice %16 {offsets = [0, 0], sizes = [16, 1], strides = [1, 1]} : vector<16x4xf32> to vector<16x1xf32>
    %23 = vector.extract_strided_slice %19 {offsets = [0, 0], sizes = [1, 128], strides = [1, 1]} : vector<4x128xf32> to vector<1x128xf32>
    %24 = vector.broadcast %22 : vector<16x1xf32> to vector<16x128xf32>
    %25 = vector.broadcast %23 : vector<1x128xf32> to vector<16x128xf32>
    %26 = arith.addf %24, %25 : vector<16x128xf32>
    %cst_18 = arith.constant 0.000000e+00 : f32
    %27 = vector.broadcast %cst_18 : f32 to vector<16x128xf32>
    %28 = arith.cmpf oge, %26, %27 : vector<16x128xf32>
    %cst_19 = arith.constant 2.000000e-01 : f32
    %29 = vector.broadcast %cst_19 : f32 to vector<16x128xf32>
    %30 = arith.mulf %29, %26 : vector<16x128xf32>
    %31 = arith.select %28, %26, %30 : vector<16x128xi1>, vector<16x128xf32>
    %cst_20 = arith.constant -1.000000e+30 : f32
    %32 = vector.broadcast %cst_20 : f32 to vector<16x128xf32>
    %33 = arith.select %9, %31, %32 : vector<16x128xi1>, vector<16x128xf32>
    %cst_21 = arith.constant dense<0xFF800000> : vector<16xf32>
    %34 = vector.multi_reduction <maximumf>, %33, %cst_21 [1] : vector<16x128xf32> to vector<16xf32>
    %35 = vector.shape_cast %34 : vector<16xf32> to vector<16x1xf32>
    %36 = vector.broadcast %35 : vector<16x1xf32> to vector<16x128xf32>
    %37 = arith.subf %31, %36 : vector<16x128xf32>
    %38 = math.exp %37 : vector<16x128xf32>
    %cst_22 = arith.constant 0.000000e+00 : f32
    %39 = vector.broadcast %cst_22 : f32 to vector<16x128xf32>
    %40 = arith.select %9, %38, %39 : vector<16x128xi1>, vector<16x128xf32>
    %cst_23 = arith.constant dense<0.000000e+00> : vector<16xf32>
    %41 = vector.multi_reduction <add>, %40, %cst_23 [1] : vector<16x128xf32> to vector<16xf32>
    %42 = vector.shape_cast %41 : vector<16xf32> to vector<16x1xf32>
    %cst_24 = arith.constant 1.000000e-16 : f32
    %43 = vector.broadcast %cst_24 : f32 to vector<16x1xf32>
    %44 = arith.addf %42, %43 : vector<16x1xf32>
    %45 = tpu.reciprocal %44 {approx = true} : vector<16x1xf32> -> vector<16x1xf32>
    %46 = vector.broadcast %45 : vector<16x1xf32> to vector<16x128xf32>
    %47 = arith.mulf %40, %46 : vector<16x128xf32>
    %48 = arith.truncf %47 : vector<16x128xf32> to vector<16x128xbf16>
    %49 = vector.broadcast %6 : vector<1x128xf32> to vector<16x128xf32>
    %50 = arith.mulf %47, %49 : vector<16x128xf32>
    %51 = arith.truncf %50 : vector<16x128xf32> to vector<16x128xbf16>
    %52 = arith.truncf %21 : vector<16x32xf32> to vector<16x32xbf16>
    %cst_25 = arith.constant dense<0.000000e+00> : vector<128x32xf32>
    %53 = tpu.matmul %51, %52, %cst_25 {dimension_numbers = #tpu.dot_dimension_numbers<[0], [0], [1], [1], [0, 1, 1, 1], [], []>} : vector<16x128xbf16>, vector<16x32xbf16>, vector<128x32xf32> -> vector<128x32xf32>
    %54 = arith.truncf %53 : vector<128x32xf32> to vector<128x32xbf16>
    %cst_26 = arith.constant dense<0.000000e+00> : vector<16x32xf32>
    %55 = tpu.matmul %48, %54, %cst_26 {dimension_numbers = #tpu.dot_dimension_numbers<[1], [0], [0], [1], [0, 0, 1, 1], [], []>} : vector<16x128xbf16>, vector<128x32xbf16>, vector<16x32xf32> -> vector<16x32xf32>
    %56 = arith.addf %20, %55 : vector<16x32xf32>
    %57 = vector.extract_strided_slice %12 {offsets = [0, 32], sizes = [16, 32], strides = [1, 1]} : vector<16x128xf32> to vector<16x32xf32>
    %58 = vector.extract_strided_slice %16 {offsets = [0, 1], sizes = [16, 1], strides = [1, 1]} : vector<16x4xf32> to vector<16x1xf32>
    %59 = vector.extract_strided_slice %19 {offsets = [1, 0], sizes = [1, 128], strides = [1, 1]} : vector<4x128xf32> to vector<1x128xf32>
    %60 = vector.broadcast %58 : vector<16x1xf32> to vector<16x128xf32>
    %61 = vector.broadcast %59 : vector<1x128xf32> to vector<16x128xf32>
    %62 = arith.addf %60, %61 : vector<16x128xf32>
    %cst_27 = arith.constant 0.000000e+00 : f32
    %63 = vector.broadcast %cst_27 : f32 to vector<16x128xf32>
    %64 = arith.cmpf oge, %62, %63 : vector<16x128xf32>
    %cst_28 = arith.constant 2.000000e-01 : f32
    %65 = vector.broadcast %cst_28 : f32 to vector<16x128xf32>
    %66 = arith.mulf %65, %62 : vector<16x128xf32>
    %67 = arith.select %64, %62, %66 : vector<16x128xi1>, vector<16x128xf32>
    %cst_29 = arith.constant -1.000000e+30 : f32
    %68 = vector.broadcast %cst_29 : f32 to vector<16x128xf32>
    %69 = arith.select %9, %67, %68 : vector<16x128xi1>, vector<16x128xf32>
    %cst_30 = arith.constant dense<0xFF800000> : vector<16xf32>
    %70 = vector.multi_reduction <maximumf>, %69, %cst_30 [1] : vector<16x128xf32> to vector<16xf32>
    %71 = vector.shape_cast %70 : vector<16xf32> to vector<16x1xf32>
    %72 = vector.broadcast %71 : vector<16x1xf32> to vector<16x128xf32>
    %73 = arith.subf %67, %72 : vector<16x128xf32>
    %74 = math.exp %73 : vector<16x128xf32>
    %cst_31 = arith.constant 0.000000e+00 : f32
    %75 = vector.broadcast %cst_31 : f32 to vector<16x128xf32>
    %76 = arith.select %9, %74, %75 : vector<16x128xi1>, vector<16x128xf32>
    %cst_32 = arith.constant dense<0.000000e+00> : vector<16xf32>
    %77 = vector.multi_reduction <add>, %76, %cst_32 [1] : vector<16x128xf32> to vector<16xf32>
    %78 = vector.shape_cast %77 : vector<16xf32> to vector<16x1xf32>
    %cst_33 = arith.constant 1.000000e-16 : f32
    %79 = vector.broadcast %cst_33 : f32 to vector<16x1xf32>
    %80 = arith.addf %78, %79 : vector<16x1xf32>
    %81 = tpu.reciprocal %80 {approx = true} : vector<16x1xf32> -> vector<16x1xf32>
    %82 = vector.broadcast %81 : vector<16x1xf32> to vector<16x128xf32>
    %83 = arith.mulf %76, %82 : vector<16x128xf32>
    %84 = arith.truncf %83 : vector<16x128xf32> to vector<16x128xbf16>
    %85 = vector.broadcast %6 : vector<1x128xf32> to vector<16x128xf32>
    %86 = arith.mulf %83, %85 : vector<16x128xf32>
    %87 = arith.truncf %86 : vector<16x128xf32> to vector<16x128xbf16>
    %88 = arith.truncf %57 : vector<16x32xf32> to vector<16x32xbf16>
    %cst_34 = arith.constant dense<0.000000e+00> : vector<128x32xf32>
    %89 = tpu.matmul %87, %88, %cst_34 {dimension_numbers = #tpu.dot_dimension_numbers<[0], [0], [1], [1], [0, 1, 1, 1], [], []>} : vector<16x128xbf16>, vector<16x32xbf16>, vector<128x32xf32> -> vector<128x32xf32>
    %90 = arith.truncf %89 : vector<128x32xf32> to vector<128x32xbf16>
    %cst_35 = arith.constant dense<0.000000e+00> : vector<16x32xf32>
    %91 = tpu.matmul %84, %90, %cst_35 {dimension_numbers = #tpu.dot_dimension_numbers<[1], [0], [0], [1], [0, 0, 1, 1], [], []>} : vector<16x128xbf16>, vector<128x32xbf16>, vector<16x32xf32> -> vector<16x32xf32>
    %92 = arith.addf %56, %91 : vector<16x32xf32>
    %93 = vector.extract_strided_slice %12 {offsets = [0, 64], sizes = [16, 32], strides = [1, 1]} : vector<16x128xf32> to vector<16x32xf32>
    %94 = vector.extract_strided_slice %16 {offsets = [0, 2], sizes = [16, 1], strides = [1, 1]} : vector<16x4xf32> to vector<16x1xf32>
    %95 = vector.extract_strided_slice %19 {offsets = [2, 0], sizes = [1, 128], strides = [1, 1]} : vector<4x128xf32> to vector<1x128xf32>
    %96 = vector.broadcast %94 : vector<16x1xf32> to vector<16x128xf32>
    %97 = vector.broadcast %95 : vector<1x128xf32> to vector<16x128xf32>
    %98 = arith.addf %96, %97 : vector<16x128xf32>
    %cst_36 = arith.constant 0.000000e+00 : f32
    %99 = vector.broadcast %cst_36 : f32 to vector<16x128xf32>
    %100 = arith.cmpf oge, %98, %99 : vector<16x128xf32>
    %cst_37 = arith.constant 2.000000e-01 : f32
    %101 = vector.broadcast %cst_37 : f32 to vector<16x128xf32>
    %102 = arith.mulf %101, %98 : vector<16x128xf32>
    %103 = arith.select %100, %98, %102 : vector<16x128xi1>, vector<16x128xf32>
    %cst_38 = arith.constant -1.000000e+30 : f32
    %104 = vector.broadcast %cst_38 : f32 to vector<16x128xf32>
    %105 = arith.select %9, %103, %104 : vector<16x128xi1>, vector<16x128xf32>
    %cst_39 = arith.constant dense<0xFF800000> : vector<16xf32>
    %106 = vector.multi_reduction <maximumf>, %105, %cst_39 [1] : vector<16x128xf32> to vector<16xf32>
    %107 = vector.shape_cast %106 : vector<16xf32> to vector<16x1xf32>
    %108 = vector.broadcast %107 : vector<16x1xf32> to vector<16x128xf32>
    %109 = arith.subf %103, %108 : vector<16x128xf32>
    %110 = math.exp %109 : vector<16x128xf32>
    %cst_40 = arith.constant 0.000000e+00 : f32
    %111 = vector.broadcast %cst_40 : f32 to vector<16x128xf32>
    %112 = arith.select %9, %110, %111 : vector<16x128xi1>, vector<16x128xf32>
    %cst_41 = arith.constant dense<0.000000e+00> : vector<16xf32>
    %113 = vector.multi_reduction <add>, %112, %cst_41 [1] : vector<16x128xf32> to vector<16xf32>
    %114 = vector.shape_cast %113 : vector<16xf32> to vector<16x1xf32>
    %cst_42 = arith.constant 1.000000e-16 : f32
    %115 = vector.broadcast %cst_42 : f32 to vector<16x1xf32>
    %116 = arith.addf %114, %115 : vector<16x1xf32>
    %117 = tpu.reciprocal %116 {approx = true} : vector<16x1xf32> -> vector<16x1xf32>
    %118 = vector.broadcast %117 : vector<16x1xf32> to vector<16x128xf32>
    %119 = arith.mulf %112, %118 : vector<16x128xf32>
    %120 = arith.truncf %119 : vector<16x128xf32> to vector<16x128xbf16>
    %121 = vector.broadcast %6 : vector<1x128xf32> to vector<16x128xf32>
    %122 = arith.mulf %119, %121 : vector<16x128xf32>
    %123 = arith.truncf %122 : vector<16x128xf32> to vector<16x128xbf16>
    %124 = arith.truncf %93 : vector<16x32xf32> to vector<16x32xbf16>
    %cst_43 = arith.constant dense<0.000000e+00> : vector<128x32xf32>
    %125 = tpu.matmul %123, %124, %cst_43 {dimension_numbers = #tpu.dot_dimension_numbers<[0], [0], [1], [1], [0, 1, 1, 1], [], []>} : vector<16x128xbf16>, vector<16x32xbf16>, vector<128x32xf32> -> vector<128x32xf32>
    %126 = arith.truncf %125 : vector<128x32xf32> to vector<128x32xbf16>
    %cst_44 = arith.constant dense<0.000000e+00> : vector<16x32xf32>
    %127 = tpu.matmul %120, %126, %cst_44 {dimension_numbers = #tpu.dot_dimension_numbers<[1], [0], [0], [1], [0, 0, 1, 1], [], []>} : vector<16x128xbf16>, vector<128x32xbf16>, vector<16x32xf32> -> vector<16x32xf32>
    %128 = arith.addf %92, %127 : vector<16x32xf32>
    %129 = vector.extract_strided_slice %12 {offsets = [0, 96], sizes = [16, 32], strides = [1, 1]} : vector<16x128xf32> to vector<16x32xf32>
    %130 = vector.extract_strided_slice %16 {offsets = [0, 3], sizes = [16, 1], strides = [1, 1]} : vector<16x4xf32> to vector<16x1xf32>
    %131 = vector.extract_strided_slice %19 {offsets = [3, 0], sizes = [1, 128], strides = [1, 1]} : vector<4x128xf32> to vector<1x128xf32>
    %132 = vector.broadcast %130 : vector<16x1xf32> to vector<16x128xf32>
    %133 = vector.broadcast %131 : vector<1x128xf32> to vector<16x128xf32>
    %134 = arith.addf %132, %133 : vector<16x128xf32>
    %cst_45 = arith.constant 0.000000e+00 : f32
    %135 = vector.broadcast %cst_45 : f32 to vector<16x128xf32>
    %136 = arith.cmpf oge, %134, %135 : vector<16x128xf32>
    %cst_46 = arith.constant 2.000000e-01 : f32
    %137 = vector.broadcast %cst_46 : f32 to vector<16x128xf32>
    %138 = arith.mulf %137, %134 : vector<16x128xf32>
    %139 = arith.select %136, %134, %138 : vector<16x128xi1>, vector<16x128xf32>
    %cst_47 = arith.constant -1.000000e+30 : f32
    %140 = vector.broadcast %cst_47 : f32 to vector<16x128xf32>
    %141 = arith.select %9, %139, %140 : vector<16x128xi1>, vector<16x128xf32>
    %cst_48 = arith.constant dense<0xFF800000> : vector<16xf32>
    %142 = vector.multi_reduction <maximumf>, %141, %cst_48 [1] : vector<16x128xf32> to vector<16xf32>
    %143 = vector.shape_cast %142 : vector<16xf32> to vector<16x1xf32>
    %144 = vector.broadcast %143 : vector<16x1xf32> to vector<16x128xf32>
    %145 = arith.subf %139, %144 : vector<16x128xf32>
    %146 = math.exp %145 : vector<16x128xf32>
    %cst_49 = arith.constant 0.000000e+00 : f32
    %147 = vector.broadcast %cst_49 : f32 to vector<16x128xf32>
    %148 = arith.select %9, %146, %147 : vector<16x128xi1>, vector<16x128xf32>
    %cst_50 = arith.constant dense<0.000000e+00> : vector<16xf32>
    %149 = vector.multi_reduction <add>, %148, %cst_50 [1] : vector<16x128xf32> to vector<16xf32>
    %150 = vector.shape_cast %149 : vector<16xf32> to vector<16x1xf32>
    %cst_51 = arith.constant 1.000000e-16 : f32
    %151 = vector.broadcast %cst_51 : f32 to vector<16x1xf32>
    %152 = arith.addf %150, %151 : vector<16x1xf32>
    %153 = tpu.reciprocal %152 {approx = true} : vector<16x1xf32> -> vector<16x1xf32>
    %154 = vector.broadcast %153 : vector<16x1xf32> to vector<16x128xf32>
    %155 = arith.mulf %148, %154 : vector<16x128xf32>
    %156 = arith.truncf %155 : vector<16x128xf32> to vector<16x128xbf16>
    %157 = vector.broadcast %6 : vector<1x128xf32> to vector<16x128xf32>
    %158 = arith.mulf %155, %157 : vector<16x128xf32>
    %159 = arith.truncf %158 : vector<16x128xf32> to vector<16x128xbf16>
    %160 = arith.truncf %129 : vector<16x32xf32> to vector<16x32xbf16>
    %cst_52 = arith.constant dense<0.000000e+00> : vector<128x32xf32>
    %161 = tpu.matmul %159, %160, %cst_52 {dimension_numbers = #tpu.dot_dimension_numbers<[0], [0], [1], [1], [0, 1, 1, 1], [], []>} : vector<16x128xbf16>, vector<16x32xbf16>, vector<128x32xf32> -> vector<128x32xf32>
    %162 = arith.truncf %161 : vector<128x32xf32> to vector<128x32xbf16>
    %cst_53 = arith.constant dense<0.000000e+00> : vector<16x32xf32>
    %163 = tpu.matmul %156, %162, %cst_53 {dimension_numbers = #tpu.dot_dimension_numbers<[1], [0], [0], [1], [0, 0, 1, 1], [], []>} : vector<16x128xbf16>, vector<128x32xbf16>, vector<16x32xf32> -> vector<16x32xf32>
    %164 = arith.addf %128, %163 : vector<16x32xf32>
    %165 = vector.broadcast %7 : vector<16x1xf32> to vector<16x32xf32>
    %166 = arith.mulf %165, %164 : vector<16x32xf32>
    %c0_54 = arith.constant 0 : index
    %c0_55 = arith.constant 0 : index
    %c0_56 = arith.constant 0 : index
    %167 = vector.load %arg7[%c0_54, %c0_55, %c0_56] : memref<1x1x32xf32, #tpu.memory_space<vmem>>, vector<1x1x32xf32>
    %168 = vector.shape_cast %167 : vector<1x1x32xf32> to vector<1x32xf32>
    %169 = vector.broadcast %168 : vector<1x32xf32> to vector<16x32xf32>
    %170 = arith.addf %166, %169 : vector<16x32xf32>
    %171 = arith.addf %3, %170 : vector<16x32xf32>
    %cst_57 = arith.constant dense<0.000000e+00> : vector<16xf32>
    %172 = vector.multi_reduction <add>, %171, %cst_57 [1] : vector<16x32xf32> to vector<16xf32>
    %173 = vector.shape_cast %172 : vector<16xf32> to vector<16x1xf32>
    %cst_58 = arith.constant 3.200000e+01 : f32
    %174 = vector.broadcast %cst_58 : f32 to vector<16x1xf32>
    %175 = arith.divf %173, %174 : vector<16x1xf32>
    %176 = vector.broadcast %175 : vector<16x1xf32> to vector<16x32xf32>
    %177 = arith.subf %171, %176 : vector<16x32xf32>
    %178 = arith.mulf %177, %177 : vector<16x32xf32>
    %cst_59 = arith.constant dense<0.000000e+00> : vector<16xf32>
    %179 = vector.multi_reduction <add>, %178, %cst_59 [1] : vector<16x32xf32> to vector<16xf32>
    %180 = vector.shape_cast %179 : vector<16xf32> to vector<16x1xf32>
    %cst_60 = arith.constant 3.200000e+01 : f32
    %181 = vector.broadcast %cst_60 : f32 to vector<16x1xf32>
    %182 = arith.divf %180, %181 : vector<16x1xf32>
    %183 = vector.broadcast %175 : vector<16x1xf32> to vector<16x32xf32>
    %184 = arith.subf %171, %183 : vector<16x32xf32>
    %cst_61 = arith.constant 9.99999974E-6 : f32
    %185 = vector.broadcast %cst_61 : f32 to vector<16x1xf32>
    %186 = arith.addf %182, %185 : vector<16x1xf32>
    %187 = math.rsqrt %186 : vector<16x1xf32>
    %188 = vector.broadcast %187 : vector<16x1xf32> to vector<16x32xf32>
    %189 = arith.mulf %184, %188 : vector<16x32xf32>
    %c0_62 = arith.constant 0 : index
    %c0_63 = arith.constant 0 : index
    %c0_64 = arith.constant 0 : index
    %190 = vector.load %arg8[%c0_62, %c0_63, %c0_64] : memref<1x1x32xf32, #tpu.memory_space<vmem>>, vector<1x1x32xf32>
    %191 = vector.shape_cast %190 : vector<1x1x32xf32> to vector<1x32xf32>
    %192 = vector.broadcast %191 : vector<1x32xf32> to vector<16x32xf32>
    %193 = arith.mulf %189, %192 : vector<16x32xf32>
    %c0_65 = arith.constant 0 : index
    %c0_66 = arith.constant 0 : index
    %c0_67 = arith.constant 0 : index
    %194 = vector.load %arg9[%c0_65, %c0_66, %c0_67] : memref<1x1x32xf32, #tpu.memory_space<vmem>>, vector<1x1x32xf32>
    %195 = vector.shape_cast %194 : vector<1x1x32xf32> to vector<1x32xf32>
    %196 = vector.broadcast %195 : vector<1x32xf32> to vector<16x32xf32>
    %197 = arith.addf %193, %196 : vector<16x32xf32>
    %198 = arith.truncf %197 : vector<16x32xf32> to vector<16x32xbf16>
    %c0_68 = arith.constant 0 : index
    %c0_69 = arith.constant 0 : index
    %c0_70 = arith.constant 0 : index
    %199 = vector.load %arg10[%c0_68, %c0_69, %c0_70] : memref<1x32x32xbf16, #tpu.memory_space<vmem>>, vector<1x32x32xbf16>
    %200 = vector.shape_cast %199 : vector<1x32x32xbf16> to vector<32x32xbf16>
    %cst_71 = arith.constant dense<0.000000e+00> : vector<16x32xf32>
    %201 = tpu.matmul %198, %200, %cst_71 {dimension_numbers = #tpu.dot_dimension_numbers<[1], [0], [0], [1], [0, 0, 1, 1], [], []>} : vector<16x32xbf16>, vector<32x32xbf16>, vector<16x32xf32> -> vector<16x32xf32>
    %c0_72 = arith.constant 0 : index
    %c0_73 = arith.constant 0 : index
    %c0_74 = arith.constant 0 : index
    %202 = vector.load %arg11[%c0_72, %c0_73, %c0_74] : memref<1x1x32xf32, #tpu.memory_space<vmem>>, vector<1x1x32xf32>
    %203 = vector.shape_cast %202 : vector<1x1x32xf32> to vector<1x32xf32>
    %204 = vector.broadcast %203 : vector<1x32xf32> to vector<16x32xf32>
    %205 = arith.addf %201, %204 : vector<16x32xf32>
    %206 = arith.truncf %205 : vector<16x32xf32> to vector<16x32xbf16>
    %c0_75 = arith.constant 0 : index
    %c0_76 = arith.constant 0 : index
    %c0_77 = arith.constant 0 : index
    %207 = vector.load %arg12[%c0_75, %c0_76, %c0_77] : memref<1x32x32xbf16, #tpu.memory_space<vmem>>, vector<1x32x32xbf16>
    %208 = vector.shape_cast %207 : vector<1x32x32xbf16> to vector<32x32xbf16>
    %cst_78 = arith.constant dense<0.000000e+00> : vector<16x32xf32>
    %209 = tpu.matmul %206, %208, %cst_78 {dimension_numbers = #tpu.dot_dimension_numbers<[1], [0], [0], [1], [0, 0, 1, 1], [], []>} : vector<16x32xbf16>, vector<32x32xbf16>, vector<16x32xf32> -> vector<16x32xf32>
    %c0_79 = arith.constant 0 : index
    %c0_80 = arith.constant 0 : index
    %c0_81 = arith.constant 0 : index
    %210 = vector.load %arg13[%c0_79, %c0_80, %c0_81] : memref<1x1x32xf32, #tpu.memory_space<vmem>>, vector<1x1x32xf32>
    %211 = vector.shape_cast %210 : vector<1x1x32xf32> to vector<1x32xf32>
    %212 = vector.broadcast %211 : vector<1x32xf32> to vector<16x32xf32>
    %213 = arith.addf %209, %212 : vector<16x32xf32>
    %cst_82 = arith.constant 0.000000e+00 : f32
    %214 = vector.broadcast %cst_82 : f32 to vector<16x32xf32>
    %215 = arith.cmpf oge, %213, %214 : vector<16x32xf32>
    %cst_83 = arith.constant 0.00999999977 : f32
    %216 = vector.broadcast %cst_83 : f32 to vector<16x32xf32>
    %217 = arith.mulf %216, %213 : vector<16x32xf32>
    %218 = arith.select %215, %213, %217 : vector<16x32xi1>, vector<16x32xf32>
    %219 = arith.addf %197, %218 : vector<16x32xf32>
    %cst_84 = arith.constant dense<0.000000e+00> : vector<16xf32>
    %220 = vector.multi_reduction <add>, %219, %cst_84 [1] : vector<16x32xf32> to vector<16xf32>
    %221 = vector.shape_cast %220 : vector<16xf32> to vector<16x1xf32>
    %cst_85 = arith.constant 3.200000e+01 : f32
    %222 = vector.broadcast %cst_85 : f32 to vector<16x1xf32>
    %223 = arith.divf %221, %222 : vector<16x1xf32>
    %224 = vector.broadcast %223 : vector<16x1xf32> to vector<16x32xf32>
    %225 = arith.subf %219, %224 : vector<16x32xf32>
    %226 = arith.mulf %225, %225 : vector<16x32xf32>
    %cst_86 = arith.constant dense<0.000000e+00> : vector<16xf32>
    %227 = vector.multi_reduction <add>, %226, %cst_86 [1] : vector<16x32xf32> to vector<16xf32>
    %228 = vector.shape_cast %227 : vector<16xf32> to vector<16x1xf32>
    %cst_87 = arith.constant 3.200000e+01 : f32
    %229 = vector.broadcast %cst_87 : f32 to vector<16x1xf32>
    %230 = arith.divf %228, %229 : vector<16x1xf32>
    %231 = vector.broadcast %223 : vector<16x1xf32> to vector<16x32xf32>
    %232 = arith.subf %219, %231 : vector<16x32xf32>
    %cst_88 = arith.constant 9.99999974E-6 : f32
    %233 = vector.broadcast %cst_88 : f32 to vector<16x1xf32>
    %234 = arith.addf %230, %233 : vector<16x1xf32>
    %235 = math.rsqrt %234 : vector<16x1xf32>
    %236 = vector.broadcast %235 : vector<16x1xf32> to vector<16x32xf32>
    %237 = arith.mulf %232, %236 : vector<16x32xf32>
    %c0_89 = arith.constant 0 : index
    %c0_90 = arith.constant 0 : index
    %c0_91 = arith.constant 0 : index
    %238 = vector.load %arg14[%c0_89, %c0_90, %c0_91] : memref<1x1x32xf32, #tpu.memory_space<vmem>>, vector<1x1x32xf32>
    %239 = vector.shape_cast %238 : vector<1x1x32xf32> to vector<1x32xf32>
    %240 = vector.broadcast %239 : vector<1x32xf32> to vector<16x32xf32>
    %241 = arith.mulf %237, %240 : vector<16x32xf32>
    %c0_92 = arith.constant 0 : index
    %c0_93 = arith.constant 0 : index
    %c0_94 = arith.constant 0 : index
    %242 = vector.load %arg15[%c0_92, %c0_93, %c0_94] : memref<1x1x32xf32, #tpu.memory_space<vmem>>, vector<1x1x32xf32>
    %243 = vector.shape_cast %242 : vector<1x1x32xf32> to vector<1x32xf32>
    %244 = vector.broadcast %243 : vector<1x32xf32> to vector<16x32xf32>
    %245 = arith.addf %241, %244 : vector<16x32xf32>
    %246 = arith.addf %3, %245 : vector<16x32xf32>
    %c0_95 = arith.constant 0 : index
    %c0_96 = arith.constant 0 : index
    %247 = vector.load %arg18[%c0_95, %c0_96] : memref<16x32xf32, #tpu.memory_space<vmem>>, vector<16x32xf32>
    %248 = arith.addf %247, %246 : vector<16x32xf32>
    %c0_97 = arith.constant 0 : index
    %c0_98 = arith.constant 0 : index
    %249 = vector.load %arg17[%c0_97, %c0_98] : memref<16x32xf32, #tpu.memory_space<vmem>>, vector<16x32xf32>
    tpu.vector_store %arg17[%c0_97, %c0_98], %246 {strides = array<i32>} : memref<16x32xf32, #tpu.memory_space<vmem>>, vector<16x32xf32>,
    %c0_99 = arith.constant 0 : index
    %c0_100 = arith.constant 0 : index
    %250 = vector.load %arg18[%c0_99, %c0_100] : memref<16x32xf32, #tpu.memory_space<vmem>>, vector<16x32xf32>
    tpu.vector_store %arg18[%c0_99, %c0_100], %248 {strides = array<i32>} : memref<16x32xf32, #tpu.memory_space<vmem>>, vector<16x32xf32>,
    %c1_i32 = arith.constant 1 : i32
    %251 = arith.cmpi eq, %arg0, %c1_i32 : i32
    %252 = arith.extui %251 : i1 to i32
    %c0_i32_101 = arith.constant 0 : i32
    %253 = arith.cmpi ne, %252, %c0_i32_101 : i32
    scf.if %253 {
      %cst_102 = arith.constant 0.333333343 : f32
      %254 = vector.broadcast %cst_102 : f32 to vector<16x32xf32>
      %255 = arith.mulf %248, %254 : vector<16x32xf32>
      %c0_103 = arith.constant 0 : index
      %c0_104 = arith.constant 0 : index
      %256 = vector.load %arg16[%c0_103, %c0_104] : memref<16x32xf32, #tpu.memory_space<vmem>>, vector<16x32xf32>
      tpu.vector_store %arg16[%c0_103, %c0_104], %255 {strides = array<i32>} : memref<16x32xf32, #tpu.memory_space<vmem>>, vector<16x32xf32>,
    } else {
    }
    return
  }
  func.func @transform_0(%arg0: i32) -> (i32, i32) {
    %c0_i32 = arith.constant 0 : i32
    %c0_i32_0 = arith.constant 0 : i32
    %c0_i32_1 = arith.constant 0 : i32
    return %c0_i32, %c0_i32_0 : i32, i32
  }
  func.func @transform_1(%arg0: i32) -> (i32, i32) {
    %c0_i32 = arith.constant 0 : i32
    %c0_i32_0 = arith.constant 0 : i32
    %c0_i32_1 = arith.constant 0 : i32
    return %c0_i32, %c0_i32_0 : i32, i32
  }
  func.func @transform_2(%arg0: i32) -> (i32, i32) {
    %c0_i32 = arith.constant 0 : i32
    %c0_i32_0 = arith.constant 0 : i32
    %c0_i32_1 = arith.constant 0 : i32
    return %c0_i32, %c0_i32_0 : i32, i32
  }
  func.func @transform_3(%arg0: i32) -> (i32, i32) {
    %c0_i32 = arith.constant 0 : i32
    %c0_i32_0 = arith.constant 0 : i32
    %c0_i32_1 = arith.constant 0 : i32
    return %c0_i32, %c0_i32_0 : i32, i32
  }
  func.func @transform_4(%arg0: i32) -> (i32, i32, i32) {
    %c0_i32 = arith.constant 0 : i32
    %c0_i32_0 = arith.constant 0 : i32
    %c0_i32_1 = arith.constant 0 : i32
    return %arg0, %c0_i32, %c0_i32_0 : i32, i32, i32
  }
  func.func @transform_5(%arg0: i32) -> (i32, i32, i32) {
    %c0_i32 = arith.constant 0 : i32
    %c0_i32_0 = arith.constant 0 : i32
    %c0_i32_1 = arith.constant 0 : i32
    return %arg0, %c0_i32, %c0_i32_0 : i32, i32, i32
  }
  func.func @transform_6(%arg0: i32) -> (i32, i32, i32) {
    %c0_i32 = arith.constant 0 : i32
    %c0_i32_0 = arith.constant 0 : i32
    %c0_i32_1 = arith.constant 0 : i32
    return %arg0, %c0_i32, %c0_i32_0 : i32, i32, i32
  }
  func.func @transform_7(%arg0: i32) -> (i32, i32, i32) {
    %c0_i32 = arith.constant 0 : i32
    %c0_i32_0 = arith.constant 0 : i32
    %c0_i32_1 = arith.constant 0 : i32
    return %arg0, %c0_i32, %c0_i32_0 : i32, i32, i32
  }
  func.func @transform_8(%arg0: i32) -> (i32, i32, i32) {
    %c0_i32 = arith.constant 0 : i32
    %c0_i32_0 = arith.constant 0 : i32
    %c0_i32_1 = arith.constant 0 : i32
    return %arg0, %c0_i32, %c0_i32_0 : i32, i32, i32
  }
  func.func @transform_9(%arg0: i32) -> (i32, i32, i32) {
    %c0_i32 = arith.constant 0 : i32
    %c0_i32_0 = arith.constant 0 : i32
    %c0_i32_1 = arith.constant 0 : i32
    return %arg0, %c0_i32, %c0_i32_0 : i32, i32, i32
  }
  func.func @transform_10(%arg0: i32) -> (i32, i32, i32) {
    %c0_i32 = arith.constant 0 : i32
    %c0_i32_0 = arith.constant 0 : i32
    %c0_i32_1 = arith.constant 0 : i32
    return %arg0, %c0_i32, %c0_i32_0 : i32, i32, i32
  }
  func.func @transform_11(%arg0: i32) -> (i32, i32, i32) {
    %c0_i32 = arith.constant 0 : i32
    %c0_i32_0 = arith.constant 0 : i32
    %c0_i32_1 = arith.constant 0 : i32
    return %arg0, %c0_i32, %c0_i32_0 : i32, i32, i32
  }
  func.func @transform_12(%arg0: i32) -> (i32, i32, i32) {
    %c0_i32 = arith.constant 0 : i32
    %c0_i32_0 = arith.constant 0 : i32
    %c0_i32_1 = arith.constant 0 : i32
    return %arg0, %c0_i32, %c0_i32_0 : i32, i32, i32
  }
  func.func @transform_13(%arg0: i32) -> (i32, i32, i32) {
    %c0_i32 = arith.constant 0 : i32
    %c0_i32_0 = arith.constant 0 : i32
    %c0_i32_1 = arith.constant 0 : i32
    return %arg0, %c0_i32, %c0_i32_0 : i32, i32, i32
  }
  func.func @transform_14(%arg0: i32) -> (i32, i32, i32) {
    %c0_i32 = arith.constant 0 : i32
    %c0_i32_0 = arith.constant 0 : i32
    %c0_i32_1 = arith.constant 0 : i32
    return %arg0, %c0_i32, %c0_i32_0 : i32, i32, i32
  }
  func.func @transform_15(%arg0: i32) -> (i32, i32) {
    %c0_i32 = arith.constant 0 : i32
    %c0_i32_0 = arith.constant 0 : i32
    %c0_i32_1 = arith.constant 0 : i32
    return %c0_i32, %c0_i32_0 : i32, i32
  }
}

</mosaic_0001>

<bundles_post_ra>
// kernel: encoder_forward_pallas.1
= control target key start
LH: loop header
LB: loop body
LE: loop exit
PB: predicated region body
PF: predicated region fallthrough
CT: control target
= control target key end

     0   :  { %s3626_s0 = inlined_call_operand.hbm [shape: f32[16,32], index: 0, kind: input, shape index: {}]   ;;  %s3627_s1 = inlined_call_operand.vmem [shape: bf16[16,128], index: 1, kind: input, shape index: {}]   ;;  %s3628_s2 = inlined_call_operand.vmem [shape: f32[1,128], index: 2, kind: input, shape index: {}]   ;;  %s3629_s3 = inlined_call_operand.vmem [shape: f32[16,1], index: 3, kind: input, shape index: {}]   ;;  %s3630_s4 = inlined_call_operand.vmem [shape: bf16[2,32,128], index: 4, kind: input, shape index: {}]   ;;  %s3631_s5 = inlined_call_operand.vmem [shape: bf16[2,32,8], index: 5, kind: input, shape index: {}]   ;;  %s3632_s6 = inlined_call_operand.vmem [shape: f32[2,1,32], index: 6, kind: input, shape index: {}, may-alias: {6,8,14}]   ;;  %s3633_s7 = inlined_call_operand.vmem [shape: f32[2,1,32], index: 7, kind: input, shape index: {}, may-alias: {7,13}]   ;;  %s3634_s8 = inlined_call_operand.vmem [shape: f32[2,1,32], index: 8, kind: input, shape index: {}, may-alias: {6,8,14}]   ;;  %s3635_s9 = inlined_call_operand.vmem [shape: bf16[2,32,32], index: 9, kind: input, shape index: {}]   ;;  %s3636_s10 = inlined_call_operand.vmem [shape: f32[2,1,32], index: 10, kind: input, shape index: {}]   ;;  %s3637_s11 = inlined_call_operand.hbm [shape: bf16[2,32,32], index: 11, kind: input, shape index: {}]   ;;  %s3638_s12 = inlined_call_operand.hbm [shape: f32[2,1,32], index: 12, kind: input, shape index: {}]   ;;  %s3639_s13 = inlined_call_operand.vmem [shape: f32[2,1,32], index: 13, kind: input, shape index: {}, may-alias: {7,13}]   ;;  %s3640_s14 = inlined_call_operand.vmem [shape: f32[2,1,32], index: 14, kind: input, shape index: {}, may-alias: {6,8,14}]   ;;  %s3641_s15 = inlined_call_operand.hbm [shape: f32[16,32], index: 15, kind: output, shape index: {}]  }
   0x1   :  { %3650 = sst [smem:[#allocation17_spill]] %s3626_s0 }
   0x2   :  { %3651 = sst [smem:[#allocation18_spill]] %s3627_s1 }
   0x3   :  { %3652 = sst [smem:[#allocation19_spill]] %s3628_s2 }
   0x4   :  { %3653 = sst [smem:[#allocation20_spill]] %s3629_s3 }
   0x5   :  { %3654 = sst [smem:[#allocation21_spill]] %s3630_s4 }
   0x6   :  { %3655 = sst [smem:[#allocation22_spill]] %s3631_s5 }
   0x7   :  { %3656 = sst [smem:[#allocation23_spill]] %s3637_s11 }
   0x8   :  { %3657 = sst [smem:[#allocation24_spill]] %s3638_s12 }
   0x9   :  { %3658 = sst [smem:[#allocation25_spill]] %s3641_s15 }
   0xa   :  { %20 = vsyncpa [#allocation5], 0 }
   0xb   :  { %21 = vsyncpa [#allocation8], 0 }
   0xc   :  { %23 = vsyncpa [#allocation8 + $0x1], 0 }
   0xd   :  { %24 = vsyncpa [#allocation6], 0  ;;  %s3067_s18 = smov 0   ;;  %s3069_s19 = smov 0  }
   0xe   :  { %s3071_s20 = smov 0   ;;  %s3073_s21 = smov 0  }
   0xf LB: > { %3659 = sst [smem:[#allocation14_spill]] %s2961_s20  ;;  %s3088_s22 = sadd.s32 1, %s2965_s21   ;;  %s2965_s21 = sphi %s3073_s21, %s3688_s21   ;;  %s2961_s20 = sphi %s3071_s20, %s3690_s20   ;;  %s2957_s19 = sphi %s3069_s19, %s3692_s19   ;;  %s2953_s18 = sphi %s3067_s18, %s3691_s18  }
  0x10   : > { %3660 = sst [smem:[#allocation15_spill]] %s3088_s22  ;;  %s303_s23 = sadd.s32 1, %s2961_s20 }
  0x11   : > { %s300_s24 = ssub.s32 %s2965_s21, %s3088_s22  ;;  %p310_p0 = scmp.ne.s32.totalorder %s2961_s20, %s2957_s19 }
  0x12   : > { %p301_p1 = scmp.eq.s32.totalorder %s300_s24, 0  ;;  %p311_p2 = scmp.eq.s32.totalorder %s2965_s21, 0 }
  0x13   : > { %p2704_p3 = scmp.lt.s32.totalorder %s2965_s21, 2  ;;  %s509_s26 = sand.u32 1, %s2965_s21  }
  0x14   : > { %s3098_s25 = scalar_select %p301_p1, %s2961_s20, %s303_s23  }
  0x15   : > { %p312_p4 = por %p311_p2, %p310_p0  ;;  %s3644_s27 = sand.u32 1, %s2961_s20  }
  0x16   : > { %3661 = sst [smem:[#allocation16_spill]] %s3098_s25  ;;  %s2327_s28 = sshll.u32 %s3644_s27, 4 }
  0x17   : > { %s2400_s29 = sshll.u32 %s2965_s21, 8  ;;  %s3662_s11 = sld [smem:[#allocation23_spill]] }
  0x18   : > { %s513_s22 = scalar_lea.vmem [#allocation7], %s2327_s28  ;;  %p3110_p5 = pnand %p2704_p3, %p312_p4 }
  0x19   : > { %s520_s24 = sshll.u32 %s513_s22, 4  ;;  %s3116_s23 = scalar_lea.sflag [#allocation8], %s509_s26  ;;  %s3114_s24 = int_to_ptr.vmem [resolvable:$true] %s520_s24 }
  0x1a   : > { %p2819_p7 = pneg %p3110_p5 }
  0x1d   : > { %s3108_s17 = scalar_lea.hbm %s3662_s11, %s2400_s29  ;;  %s2822_s29 = scalar_lea.hbm %s3662_s11, 512 }
  0x1e   : > { %s2817_s27 = scalar_lea.hbm %s3108_s17, 256  ;;  %p2823_p10 = scmp.lt.s32.totalorder %s3108_s17, %s3662_s11 }
  0x1f   : > { %p2818_p6 = scmp.ne.s32.totalorder %s3108_s17, %s2817_s27  ;;  %p2824_p11 = scmp.lt.s32.totalorder %s2822_s29, %s2817_s27 }
  0x21   : > { %p2820_p8 = pnand %p2819_p7, %p2818_p6  ;;  %p2825_p12 = por %p2824_p11, %p2823_p10 }
  0x23   : > { %p2821_p9 = pneg %p2820_p8 }
  0x25   : > { %p2826_p13 = pnand %p2825_p12, %p2821_p9 }
  0x27   : > { %2829 = shalt.err (!%p2826_p13)
}
  0x28   : > { %s2830_s26 = scalar_lea.vmem %s3114_s24, 256  ;;  %s2967_s28 = smov [#allocation7]  }
  0x29   : > { %p2831_p0 = scmp.ne.s32.totalorder %s3114_s24, %s2830_s26  ;;  %s2835_s22 = sshll.u32 %s2967_s28, 4  ;;  %s2836_s22 = int_to_ptr.vmem [resolvable:$false] %s2835_s22 }
  0x2a   : > { %s2837_s25 = scalar_lea.vmem %s2836_s22, 512  ;;  %p2838_p3 = scmp.lt.s32.totalorder %s3114_s24, %s2836_s22 }
  0x2b   : > { %p2833_p1 = pnand %p2831_p0, %p2819_p7  ;;  %p2839_p4 = scmp.lt.s32.totalorder %s2837_s25, %s2830_s26 }
  0x2d   : > { %p2834_p2 = pneg %p2833_p1  ;;  %p2840_p6 = por %p2839_p4, %p2838_p3 }
  0x2f   : > { %p2841_p8 = pnand %p2840_p6, %p2834_p2 }
  0x31   : > { %2844 = shalt.err (!%p2841_p8)
}
  0x32   : > { %s2968_s27 = smov 64   ;;  %s2969_s29 = smov 4  }
  0x33   : > { %2699 = dma.hbm_to_vmem [thread:$0]  (!%p3110_p5), %s3108_s17, 256, %s3114_s24, %s3116_s23, %s2968_s27, %s2968_s27, %s2969_s29  }
  0x34   : > { %s3144_s30 = sadd.s32 4294967295, %s2965_s21   ;;  %p316_p10 = scmp.ne.s32.totalorder %s2957_s19, %s2953_s18 }
  0x35   : > { %p3648_p9 = scmp.eq.s32.totalorder %s3144_s30, 0  ;;  %p2324_p11 = scmp.ge.s32.totalorder %s2965_s21, 1 }
  0x36   : > { %p426_p12 = scmp.lt.s32.totalorder %s2965_s21, 3  ;;  %s2970_s17 = smov [#allocation4]  }
  0x37   : > { %p3154_p0 = por %p3648_p9, %p316_p10  ;;  %s438_s24 = sshll.u32 %s2970_s17, 4  ;;  %s439_s24 = int_to_ptr.vmem [resolvable:$true] %s438_s24 }
  0x38   : > { %p3158_p1 = pnand %p2324_p11, %p426_p12  ;;  %s2330_s26 = sshll.u32 %s2965_s21, 4 }
  0x39   : > { %s3664_s25 = scalar_select %p3154_p0, 1, 0 }
  0x3a   : > { %p2692_p2 = pneg %p3158_p1  ;;  %s3667_s12 = sld [smem:[#allocation24_spill]] }
  0x3b   : > { %s3668_s29 = sand.u32 1, %s2961_s20   ;;  %s2856_s17 = scalar_lea.vmem %s439_s24, 256 }
  0x3c   : > { %p3167_p3 = pnand %p2692_p2, %p3648_p9  ;;  %s533_s11 = scalar_lea.vmem [#allocation9], %s3668_s29 }
  0x3d   : > { %s540_s3 = sshll.u32 %s533_s11, 4  ;;  %p2857_p6 = scmp.ne.s32.totalorder %s439_s24, %s2856_s17  ;;  %s3178_s3 = int_to_ptr.vmem [resolvable:$true] %s540_s3 }
  0x3e   : > { %p2847_p4 = pneg %p3167_p3  ;;  %p2864_p11 = scmp.lt.s32.totalorder %s439_s24, %s439_s24 }
  0x3f   : > { %p2865_p12 = scmp.lt.s32.totalorder %s2856_s17, %s2856_s17 }
  0x40   : > { %s3174_s27 = scalar_lea.hbm %s3667_s12, %s2330_s26  ;;  %p2859_p8 = pnand %p2857_p6, %p2847_p4 }
  0x41   : > { %p2866_p2 = por %p2865_p12, %p2864_p11 }
  0x42   : > { %p2860_p10 = pneg %p2859_p8 }
  0x44   : > { %p2867_p13 = pnand %p2866_p2, %p2860_p10 }
  0x46   : > { %2870 = shalt.err (!%p2867_p13)
}
  0x47   : > { %s2971_s21 = smov 128   ;;  %s2972_s11 = smov 8  }
  0x48   : > { %s3669_s0 = sld [smem:[#allocation17_spill]]  ;;  %s2871_s22 = scalar_lea.hbm %s3174_s27, 16 }
  0x49   : > { %p2872_p4 = scmp.ne.s32.totalorder %s3174_s27, %s2871_s22  ;;  %s2876_s20 = scalar_lea.hbm %s3667_s12, 32 }
  0x4a   : > { %p2877_p13 = scmp.lt.s32.totalorder %s3174_s27, %s3667_s12  ;;  %p2878_p10 = scmp.lt.s32.totalorder %s2876_s20, %s2871_s22 }
  0x4b   : > { %p2874_p6 = pnand %p2872_p4, %p2819_p7 }
  0x4c   : > { %p2879_p11 = por %p2878_p10, %p2877_p13 }
  0x4d   : > { %p2875_p8 = pneg %p2874_p6 }
  0x4e   : > { %2695 = dma.hbm_to_vmem [thread:$0]  (!%p3167_p3), %s3669_s0, 256, %s439_s24, [#allocation5], %s2971_s21, %s2971_s21, %s2972_s11  }
  0x4f   : > { %p2880_p12 = pnand %p2879_p11, %p2875_p8 }
  0x51   : > { %2883 = shalt.err (!%p2880_p12)
}
  0x52   : > { %s2884_s24 = scalar_lea.vmem %s3178_s3, 16  ;;  %s2973_s18 = smov [#allocation9]  }
  0x53   : > { %p2885_p3 = scmp.ne.s32.totalorder %s3178_s3, %s2884_s24  ;;  %s2889_s21 = sshll.u32 %s2973_s18, 4  ;;  %s2890_s21 = int_to_ptr.vmem [resolvable:$false] %s2889_s21 }
  0x54   : > { %s2891_s11 = scalar_lea.vmem %s2890_s21, 32  ;;  %p2892_p6 = scmp.lt.s32.totalorder %s3178_s3, %s2890_s21 }
  0x55   : > { %p2887_p2 = pnand %p2885_p3, %p2819_p7  ;;  %p2893_p9 = scmp.lt.s32.totalorder %s2891_s11, %s2884_s24 }
  0x57   : > { %p2888_p4 = pneg %p2887_p2  ;;  %p2894_p0 = por %p2893_p9, %p2892_p6 }
  0x59   : > { %p2895_p13 = pnand %p2894_p0, %p2888_p4 }
  0x5b   : > { %2898 = shalt.err (!%p2895_p13)
}
  0x5c   : > { %2702 = dma.hbm_to_vmem [thread:$0]  (!%p3110_p5), %s3174_s27, 16, %s3178_s3, %s3116_s23  }
  0x5d   : > { %561 = sbr.rel (%p3158_p1) target bundleno = 3182 (0xc6e), region = 80  ;;  %p3670_p7 = scmp.eq.s32.totalorder (!%p3158_p1), %s3144_s30, 0 }
  0x62   : > { %2940 = dma.done.wait (%p3670_p7), [#allocation5], 256   ;;  %p3671_p8 = pmov %p3670_p7 }
  0x63   : > { %s567_s1 = sand.u32 1, %s3144_s30   ;;  %s569_s2 = sand.u32 1, %s2957_s19  }
  0x64   : > { %2942 = vsyncadd (%p3671_p8), [#allocation5], 4294967040  ;;  %s3218_s20 = sshll.u32 %s569_s2, 4  ;;  %s568_s15 = scalar_lea.sflag [#allocation8], %s567_s1 }
  0x65   : > { %p3672_p5 = scmp.ne.s32.totalorder %s3664_s25, 0 }
  0x67   : > { %2944 = dma.done.wait (%p3672_p5), %s568_s15, 272  }
  0x68   : > { %2946 = vsyncadd (%p3672_p5), %s568_s15, 4294967024  ;;  %p658_p9 = scmp.lt.s32.totalorder %s3144_s30, 1  ;;  %s3673_s4 = sld [smem:[#allocation21_spill]] }
  0x69   : > { %s3674_s5 = sld [smem:[#allocation22_spill]]  ;;  %s3267_s1 = scalar_lea.vmem [#allocation9], %s569_s2 }
  0x6a   : > { %s3227_s3 = scalar_select %p658_p9, %s3144_s30, 1 }
  0x6b   : > { %p3675_p0 = scmp.ne.s32.totalorder %s3144_s30, 0 }
  0x6c   : > { %s2401_s23 = sshll.u32 %s3227_s3, 4  ;;  %s676_s0 = scalar_lea.vmem %s3634_s8, %s3227_s3 }
  0x6d   : > { %s3253_s27 = scalar_lea.vmem %s3635_s9, %s2401_s23  ;;  %s684_s28 = scalar_lea.vmem %s3636_s10, %s3227_s3 }
  0x6e   : > { %s3237_s29 = scalar_lea.vmem %s3673_s4, %s2401_s23  ;;  %s687_s24 = scalar_lea.vmem %s3639_s13, %s3227_s3 }
  0x6f   : > { %s667_s18 = scalar_lea.vmem %s3674_s5, %s2401_s23  ;;  %s690_s11 = scalar_lea.vmem %s3640_s14, %s3227_s3 }
  0x70   : > { %697 = sbr.rel (%p3675_p0) target bundleno = 120 (0x78), region = 96 }
  0x75   : > { %v698_v0 = vld [vmem:[#allocation4] sm:$0xff]  ;;  %vm700_vm0 = vcmask 261120   ;;  %v699_v1 = vld [vmem:[#allocation4 + $0x8] sm:$0xff] }
  0x76   : > { %701 = vst.msk [vmem:[#allocation2] sm:$0xff] %vm700_vm0, %v698_v0  ;;  %702 = vst.msk [vmem:[#allocation2 + $0x8] sm:$0xff] %vm700_vm0, %v699_v1 }
  0x77   : > { %705 = vst.msk [vmem:[#allocation3] sm:$0xff] %vm700_vm0, %v698_v0  ;;  %706 = vst.msk [vmem:[#allocation3 + $0x8] sm:$0xff] %vm700_vm0, %v699_v1 }
  0x78 PF: > { %v2766_v2 = vld [vmem:[%s667_s18 + $0x8] sm:$0xff]   ;;  %v2974_v3 = vmov 0.0   ;;  %v2767_v4 = vld [vmem:[%s667_s18] sm:$0xff]   ;;  %vm2975_vm1 = vmmov 0   ;;  %v2976_v7 = vmov 1   ;;  %vm733_vm2 = vcmask 261120  }
  0x79   : > { %2498 = vmatprep.subr.bf16.mxu1 %v2974_v3  ;;  %2490 = vmatprep.subr.bf16.mxu0 %v2974_v3  ;;  %v2768_v10 = vld [vmem:[%s3237_s29 + $0x8] sm:$0xff]   ;;  %v2769_v12 = vld [vmem:[%s3237_s29] sm:$0xff]   ;;  %s3676_s12 = sld [smem:[#allocation18_spill]]  ;;  %s2977_s23 = smov 124   ;;  %v2978_v19 = vmov 0   ;;  %vm862_vm3 = vcmask 130048   ;;  %v916_v27 = vlaneseq }
  0x7a   : > { %2499 = vmatpush3.bf16.msra.mxu1 %v2766_v2  ;;  %2502 = vmatprep.mubr.msk.bf16.mxu1 %vm2975_vm1, %v2974_v3  ;;  %s2979_s29 = smov 96   ;;  %s3681_s16 = sld [smem:[#allocation19_spill]] }
  0x7b   : > { %2500 = vmatprep.subr.bf16.mxu1 %v2974_v3  ;;  %2758 = vset.pattern.permute.xlu1 %v2976_v7  ;;  %v917_v28 = vshrl.u32 %v916_v27, 7  ;;  %s2982_s22 = smov 64   ;;  %s2983_s25 = smov 32  }
  0x7c   : > { %2494 = vmatprep.mubr.msk.bf16.mxu0 %vm2975_vm1, %v2974_v3  ;;  %2491 = vmatpush3.bf16.msra.mxu0 %v2768_v10  ;;  %s3682_s4 = sld [smem:[#allocation20_spill]]  ;;  %p2395_p1 = scmp.ne.s32.totalorder %s3144_s30, 1 }
  0x7d   : > { %v707_v5 = vld [vmem:[#allocation2] sm:$0xff]  ;;  %v708_v6 = vld [vmem:[#allocation2 + $0x8] sm:$0xff]  ;;  %2492 = vmatprep.subr.bf16.mxu0 %v2974_v3  ;;  %v1124_v32 = vsub.s32 1, %v917_v28  ;;  %v918_v33 = vsub.s32 0, %v917_v28  ;;  %v1403_v34 = vsub.s32 2, %v917_v28  ;;  %v1642_v35 = vsub.s32 3, %v917_v28 }
  0x7e   : > { %v709_v8 = vpack.c.bf16 %v708_v6, %v707_v5  ;;  %2501 = vmatpush3.bf16.msra.mxu1 %v2767_v4  ;;  %v2980_v4 = vmov 2   ;;  %v2981_v5 = vmov 3  }
  0x7f   : > { %v710_v13 = vld [vmem:[%s3676_s12] sm:$0xf]  ;;  %v711_v14 = vld [vmem:[%s3676_s12 + $0x4] sm:$0xf] }
  0x80   : > { %2493 = vmatpush3.bf16.msra.mxu0 %v2769_v12  ;;  %v2347_v18 = vcombine.low %v710_v13, %v711_v14  ;;  %vm715_vm4 = vcmp.gt.bf16.partialorder %v710_v13, 0  ;;  %vm716_vm5 = vcmp.gt.bf16.partialorder %v711_v14, 0 }
  0x81   : > { %2503 = vmatmul.mubr.msk.bf16.vlgmr.msra.gmra.mxu1 %vm733_vm2, %v709_v8  ;;  %2506 = vmatprep.subr.bf16.mxu0 %v2974_v3  ;;  %v928_v30 = vsel %vm715_vm4, 65537, %v2978_v19  ;;  %v929_v31 = vsel %vm716_vm5, 65537, %v2978_v19 }
  0x82   : > { %v930_v36 = vunpack.c.l.b16 %v928_v30  ;;  %v931_v37 = vunpack.c.l.b16 %v929_v31 }
  0x83   : > { %2495 = vmatmul.mubr.msk.bf16.vlgmr.msra.gmra.mxu0 %vm733_vm2, %v709_v8 }
  0x84   : > { %2507 = vmatpush3.bf16.msra.mxu0 %v2347_v18  ;;  %2508 = vmatprep.mubr.msk.bf16.mxu0 %vm2975_vm1, %v2974_v3  ;;  %vm3316_vm6 = vcmp.ne.s32.totalorder %v930_v36, 0  ;;  %vm3320_vm7 = vcmp.ne.s32.totalorder %v931_v37, 0 }
 0x141   : > { %v3279_v9 = vpop.f32.mrf.mxu1 }
 0x142   : > { %1115 = vperm.xlu1 %2758, %v3279_v9  }
 0x143   : > { %v2504_v11 = vpop.f32.mrf.mxu1  ;;  %v771_v21 = vpop.f32.mrf.mxu0 }
 0x145   : > { %v3291_v15 = vpop.f32.mrf.mxu1  ;;  %v2496_v22 = vpop.f32.mrf.mxu0 }
 0x146   : > { %1119 = vperm.xlu1 %2758, %v3291_v15   ;;  %v835_v16 = vpack.c.bf16 %v3291_v15, %v3279_v9 }
 0x147   : > { %v2505_v17 = vpop.f32.mrf.mxu1  ;;  %v774_v23 = vpop.f32.mrf.mxu0 }
 0x148   : > { %837 = vrot.lane.b32.xlu0 %v835_v16, %s2977_s23  ;;  %v3302_v24 = vpack.c.bf16 %v774_v23, %v771_v21  ;;  %v3347_v21 = vld [vmem:[%s3681_s16] ss:$0 sm:$0xff]  ;;  %s3684_s16 = scalar_lea.vmem %s3633_s7, %s3227_s3 }
 0x149   : > { %v2497_v25 = vpop.f32.mrf.mxu0 }
 0x14a   : > { %2759 = vset.pattern.permute.xlu1 %v2978_v19  ;;  %2512 = vmatprep.subr.bf16.mxu1 %v3302_v24 }
 0x14b   : > { %2513 = vmatpush3.bf16.msra.mxu1 %v3302_v24 }
 0x14c   : > { %2548 = vmatprep.subr.bf16.mxu1 %v2974_v3 }
 0x1ba   : > { %v838_v20 = vpop.permute.xlu0 %837 }
 0x1bb   : > { %840 = vxpose.xlu0.c.b16.start.end [1/1] (short) (narrow) %v838_v20, 16 }
 0x1bd   : > { %v1116_v29 = vpop.permute.xlu1 %1115 }
 0x1c1   : > { %v1120_v43 = vpop.permute.xlu1 %1119 }
 0x1c4   : > { %2760 = vset.pattern.permute.xlu0 %v2978_v19 }
 0x21d   : > { %v848_v26 = vpop.trf.xlu0 }
 0x21e   : > { %2509 = vmatmul.mubr.msk.bf16.vlgmr.msra.gmra.mxu0 %vm862_vm3, %v848_v26 }
 0x2de   : > { %v900_v38 = vpop.f32.mrf.mxu0 }
 0x2df   : > { %v1125_v39 = vrot.slane %v900_v38, %v1124_v32  ;;  %v3310_v40 = vrot.slane %v900_v38, %v918_v33  ;;  %v3312_v41 = vrot.slane %v900_v38, %v1403_v34  ;;  %v3314_v42 = vrot.slane %v900_v38, %v1642_v35 }
 0x2e0   : > { %v2510_v44 = vpop.f32.mrf.mxu0 }
 0x2e1   : > { %v1127_v45 = vadd.f32 %v1125_v39, %v1120_v43  ;;  %v1126_v46 = vadd.f32 %v1125_v39, %v1116_v29 }
 0x2e2   : > { %v903_v49 = vpop.f32.mrf.mxu0 }
 0x2e3   : > { %vm1129_vm8 = vcmp.ge.f32.partialorder %v1127_v45, 0.0  ;;  %v1131_v50 = vmul.f32 0.2, %v1127_v45  ;;  %vm1128_vm9 = vcmp.ge.f32.partialorder %v1126_v46, 0.0  ;;  %v1130_v51 = vmul.f32 0.2, %v1126_v46 }
 0x2e4   : > { %v2511_v52 = vpop.f32.mrf.mxu0 }
 0x2e5   : > { %v1133_v53 = vsel %vm1129_vm8, %v1127_v45, %v1131_v50  ;;  %v1132_v54 = vsel %vm1128_vm9, %v1126_v46, %v1130_v51 }
 0x2e6   : > { %v1135_v55 = vsel %vm3320_vm7, %v1133_v53, -1e+30  ;;  %v1134_v56 = vsel %vm3316_vm6, %v1132_v54, -1e+30 }
 0x2e7   : > { %1138 = vmax.xlane.f32.xlu0 %v1135_v55  ;;  %1136 = vmax.xlane.f32.xlu1 %v1134_v56 }
 0x370   : > { %v1139_v57 = vpop.xlane.xlu0 %1138  ;;  %v1137_v58 = vpop.xlane.xlu1 %1136 }
 0x371   : > { %v1141_v59 = vsub.f32 %v1133_v53, %v1139_v57  ;;  %v1140_v60 = vsub.f32 %v1132_v54, %v1137_v58 }
 0x373   : > { %v1144_v61 = vmul.f32 1.442695, %v1141_v59  ;;  %v1142_v62 = vmul.f32 1.442695, %v1140_v60 }
 0x375   : > { %2775 = vpow2.f32 %v1144_v61 }
 0x376   : > { %2777 = vpow2.f32 %v1142_v62 }
 0x382   : > { %v2776_v63 = vpop.eup %2775 }
 0x383   : > { %v2778_v0 = vpop.eup %2777  ;;  %v1147_v1 = vsel %vm3320_vm7, %v2776_v63, 0.0 }
 0x384   : > { %1150 = vadd.xlane.f32.xlu0 %v1147_v1  ;;  %v1146_v2 = vsel %vm3316_vm6, %v2778_v0, 0.0 }
 0x385   : > { %1148 = vadd.xlane.f32.xlu1 %v1146_v2 }
 0x396   : > { %908 = vperm.xlu1 %2759, %v3279_v9  }
 0x39a   : > { %1179 = vrot.lane.b32.xlu1 %v3302_v24, %s2979_s29  ;;  %913 = vperm.xlu0 %2760, %v3291_v15   ;;  %s3683_s29 = scalar_lea.vmem %s3632_s6, %s3227_s3 }
 0x39e   : > { %2761 = vset.pattern.permute.xlu0 %v2980_v4 }
 0x39f   : > { %1394 = vperm.xlu0 %2761, %v3279_v9  }
 0x3a3   : > { %1398 = vperm.xlu0 %2761, %v3291_v15  }
 0x3a7   : > { %2762 = vset.pattern.permute.xlu0 %v2981_v5 }
 0x40d   : > { %v1151_v6 = vpop.xlane.xlu0 %1150 }
 0x40e   : > { %v1153_v7 = vadd.f32 1e-16, %v1151_v6  ;;  %v1149_v8 = vpop.xlane.xlu1 %1148 }
 0x40f   : > { %v1152_v10 = vadd.f32 1e-16, %v1149_v8 }
 0x410   : > { %2779 = vrcp.f32 %v1153_v7 }
 0x411   : > { %2781 = vrcp.f32 %v1152_v10 }
 0x412   : > { %v909_v11 = vpop.permute.xlu1 %908 }
 0x413   : > { %v920_v31 = vadd.f32 %v3310_v40, %v909_v11 }
 0x415   : > { %v914_v12 = vpop.permute.xlu0 %913  ;;  %v924_v34 = vmul.f32 0.2, %v920_v31  ;;  %vm922_vm11 = vcmp.ge.f32.partialorder %v920_v31, 0.0 }
 0x416   : > { %v921_v13 = vadd.f32 %v3310_v40, %v914_v12  ;;  %v1180_v14 = vpop.permute.xlu1 %1179 }
 0x417   : > { %2530 = vmatprep.subr.bf16.mxu0 %v1180_v14  ;;  %v926_v36 = vsel %vm922_vm11, %v920_v31, %v924_v34 }
 0x418   : > { %v925_v16 = vmul.f32 0.2, %v921_v13  ;;  %2531 = vmatpush3.bf16.msra.mxu0 %v1180_v14  ;;  %vm923_vm10 = vcmp.ge.f32.partialorder %v921_v13, 0.0  ;;  %v934_v37 = vsel %vm3316_vm6, %v926_v36, -1e+30 }
 0x419   : > { %2568 = vmatprep.subr.bf16.mxu0 %v2974_v3 }
 0x41a   : > { %v3339_v17 = vsel %vm923_vm10, %v921_v13, %v925_v16  ;;  %v1395_v30 = vpop.permute.xlu0 %1394 }
 0x41b   : > { %v935_v18 = vsel %vm3320_vm7, %v3339_v17, -1e+30 }
 0x41c   : > { %938 = vmax.xlane.f32.xlu0 %v935_v18 }
 0x41d   : > { %v2780_v20 = vpop.eup %2779 }
 0x41e   : > { %v2782_v22 = vpop.eup %2781  ;;  %v3349_v23 = vmul.f32 %v2780_v20, %v1147_v1  ;;  %v1399_v32 = vpop.permute.xlu0 %1398 }
 0x41f   : > { %v3351_v25 = vmul.f32 %v2782_v22, %v1146_v2  ;;  %v1406_v33 = vadd.f32 %v3312_v41, %v1399_v32 }
 0x420   : > { %v1160_v26 = vmul.f32 %v3347_v21, %v3349_v23 }
 0x421   : > { %v1159_v27 = vmul.f32 %v3347_v21, %v3351_v25  ;;  %v1158_v28 = vpack.c.bf16 %v3349_v23, %v3351_v25  ;;  %v1410_v35 = vmul.f32 0.2, %v1406_v33  ;;  %vm1408_vm12 = vcmp.ge.f32.partialorder %v1406_v33, 0.0 }
 0x423   : > { %v1161_v29 = vpack.c.bf16 %v1160_v26, %v1159_v27  ;;  %v1412_v38 = vsel %vm1408_vm12, %v1406_v33, %v1410_v35 }
 0x424   : > { %v1414_v39 = vsel %vm3320_vm7, %v1412_v38, -1e+30 }
 0x425   : > { %1162 = vxpose.xlu1.c.b16.start.end [1/1] (short) %v1161_v29, 128 }
 0x429   : > { %2763 = vset.pattern.permute.xlu1 %v2981_v5 }
 0x432   : > { %1633 = vperm.xlu0 %2762, %v3279_v9   ;;  %v1405_v9 = vadd.f32 %v3312_v41, %v1395_v30 }
 0x434   : > { %v1409_v40 = vmul.f32 0.2, %v1405_v9  ;;  %vm1407_vm13 = vcmp.ge.f32.partialorder %v1405_v9, 0.0 }
 0x436   : > { %v1411_v43 = vsel %vm1407_vm13, %v1405_v9, %v1409_v40 }
 0x437   : > { %v1413_v44 = vsel %vm3316_vm6, %v1411_v43, -1e+30 }
 0x44e   : > { %936 = vmax.xlane.f32.xlu1 %v934_v37 }
 0x451   : > { %1417 = vmax.xlane.f32.xlu0 %v1414_v39 }
 0x45f   : > { %1637 = vperm.xlu1 %2763, %v3291_v15  }
 0x483   : > { %1415 = vmax.xlane.f32.xlu1 %v1413_v44 }
 0x487   : > { %v1170_v45 = vpop.trf.xlu1 }
 0x488   : > { %2532 = vmatprep.mubr.msk.bf16.mxu0 %vm862_vm3, %v1170_v45 }
 0x48b   : > { %v1171_v46 = vpop.trf.xlu1 }
 0x48c   : > { %2533 = vmatmul.mubr.msk.bf16.vlgmr.msra.gmra.mxu0 %vm862_vm3, %v1171_v46 }
 0x48f   : > { %v1172_v49 = vpop.trf.xlu1 }
 0x490   : > { %2536 = vmatprep.mubr.msk.bf16.mxu0 %vm862_vm3, %v1172_v49 }
 0x493   : > { %v1173_v50 = vpop.trf.xlu1 }
 0x494   : > { %2537 = vmatmul.mubr.msk.bf16.gmra.mxu0 %vm862_vm3, %v1173_v50 }
 0x497   : > { %v1174_v15 = vpop.trf.xlu1 }
 0x498   : > { %2540 = vmatprep.mubr.msk.bf16.mxu0 %vm862_vm3, %v1174_v15 }
 0x49b   : > { %v1175_v41 = vpop.trf.xlu1 }
 0x49c   : > { %2541 = vmatmul.mubr.msk.bf16.gmra.mxu0 %vm862_vm3, %v1175_v41 }
 0x49f   : > { %v1176_v51 = vpop.trf.xlu1 }
 0x4a0   : > { %2544 = vmatprep.mubr.msk.bf16.mxu0 %vm862_vm3, %v1176_v51 }
 0x4a3   : > { %v1177_v52 = vpop.trf.xlu1 }
 0x4a4   : > { %2545 = vmatmul.mubr.msk.bf16.gmra.mxu0 %vm862_vm3, %v1177_v52 }
 0x4a5   : > { %2584 = vmatprep.mubr.msk.bf16.mxu0 %vm2975_vm1, %v2974_v3  ;;  %v939_v53 = vpop.xlane.xlu0 %938 }
 0x4a6   : > { %v941_v59 = vsub.f32 %v3339_v17, %v939_v53 }
 0x4a8   : > { %v944_v62 = vmul.f32 1.442695, %v941_v59 }
 0x4ad   : > { %v1634_v54 = vpop.permute.xlu0 %1633 }
 0x4ae   : > { %v1644_v55 = vadd.f32 %v3314_v42, %v1634_v54 }
 0x4b0   : > { %v1648_v56 = vmul.f32 0.2, %v1644_v55  ;;  %vm1646_vm14 = vcmp.ge.f32.partialorder %v1644_v55, 0.0 }
 0x4b2   : > { %v1650_v57 = vsel %vm1646_vm14, %v1644_v55, %v1648_v56 }
 0x4b3   : > { %v1652_v58 = vsel %vm3316_vm6, %v1650_v57, -1e+30 }
 0x4b4   : > { %1654 = vmax.xlane.f32.xlu1 %v1652_v58 }
 0x4d7   : > { %v937_v60 = vpop.xlane.xlu1 %936 }
 0x4d8   : > { %v940_v61 = vsub.f32 %v926_v36, %v937_v60 }
 0x4da   : > { %v942_v63 = vmul.f32 1.442695, %v940_v61  ;;  %v1418_v0 = vpop.xlane.xlu0 %1417 }
 0x4db   : > { %v1420_v1 = vsub.f32 %v1412_v38, %v1418_v0  ;;  %v1638_v2 = vpop.permute.xlu1 %1637 }
 0x4dc   : > { %2783 = vpow2.f32 %v942_v63  ;;  %v1645_v4 = vadd.f32 %v3314_v42, %v1638_v2 }
 0x4dd   : > { %2785 = vpow2.f32 %v944_v62  ;;  %v1423_v5 = vmul.f32 1.442695, %v1420_v1 }
 0x4de   : > { %v1649_v6 = vmul.f32 0.2, %v1645_v4  ;;  %vm1647_vm15 = vcmp.ge.f32.partialorder %v1645_v4, 0.0 }
 0x4df   : > { %2787 = vpow2.f32 %v1423_v5 }
 0x4e0   : > { %v1651_v7 = vsel %vm1647_vm15, %v1645_v4, %v1649_v6 }
 0x4e1   : > { %v1653_v8 = vsel %vm3320_vm7, %v1651_v7, -1e+30 }
 0x4e2   : > { %1656 = vmax.xlane.f32.xlu1 %v1653_v8 }
 0x4e9   : > { %v2784_v10 = vpop.eup %2783 }
 0x4ea   : > { %v946_v11 = vsel %vm3316_vm6, %v2784_v10, 0.0  ;;  %v2786_v12 = vpop.eup %2785 }
 0x4eb   : > { %948 = vadd.xlane.f32.xlu1 %v946_v11  ;;  %v947_v13 = vsel %vm3320_vm7, %v2786_v12, 0.0 }
 0x4ec   : > { %v2788_v42 = vpop.eup %2787 }
 0x4ed   : > { %v1426_v14 = vsel %vm3320_vm7, %v2788_v42, 0.0 }
 0x4ef   : > { %950 = vadd.xlane.f32.xlu1 %v947_v13 }
 0x4f3   : > { %1429 = vadd.xlane.f32.xlu1 %v1426_v14 }
 0x50c   : > { %v1416_v16 = vpop.xlane.xlu1 %1415 }
 0x50d   : > { %v1419_v17 = vsub.f32 %v1411_v43, %v1416_v16 }
 0x50f   : > { %v1421_v18 = vmul.f32 1.442695, %v1419_v17 }
 0x511   : > { %2789 = vpow2.f32 %v1421_v18 }
 0x51e   : > { %v2790_v20 = vpop.eup %2789 }
 0x51f   : > { %v1425_v22 = vsel %vm3316_vm6, %v2790_v20, 0.0 }
 0x520   : > { %1427 = vadd.xlane.f32.xlu0 %v1425_v22 }
 0x53d   : > { %v1655_v26 = vpop.xlane.xlu1 %1654 }
 0x53e   : > { %v1658_v27 = vsub.f32 %v1650_v57, %v1655_v26 }
 0x540   : > { %v1660_v29 = vmul.f32 1.442695, %v1658_v27 }
 0x542   : > { %2791 = vpow2.f32 %v1660_v29 }
 0x54c   : > { %v3420_v55 = vpop.f32.mrf.mxu0 }
 0x54e   : > { %v3430_v60 = vpop.f32.mrf.mxu0 }
 0x54f   : > { %v2792_v30 = vpop.eup %2791 }
 0x550   : > { %v3397_v31 = vsel %vm3316_vm6, %v2792_v30, 0.0  ;;  %v2535_v61 = vpop.f32.mrf.mxu0 }
 0x551   : > { %1666 = vadd.xlane.f32.xlu0 %v3397_v31 }
 0x552   : > { %v1243_v62 = vpop.f32.mrf.mxu0 }
 0x554   : > { %v2538_v63 = vpop.f32.mrf.mxu0 }
 0x556   : > { %v1256_v0 = vpop.f32.mrf.mxu0 }
 0x558   : > { %v2539_v1 = vpop.f32.mrf.mxu0 }
 0x559   : > { %v1306_v30 = vpack.c.bf16 %v2539_v1, %v2538_v63 }
 0x55a   : > { %v1259_v2 = vpop.f32.mrf.mxu0 }
 0x55c   : > { %v2542_v4 = vpop.f32.mrf.mxu0 }
 0x55e   : > { %v1272_v5 = vpop.f32.mrf.mxu0 }
 0x560   : > { %v2543_v6 = vpop.f32.mrf.mxu0 }
 0x561   : > { %v1308_v20 = vpack.c.bf16 %v2543_v6, %v2542_v4 }
 0x56b   : > { %v1657_v32 = vpop.xlane.xlu1 %1656 }
 0x56c   : > { %v1659_v33 = vsub.f32 %v1651_v7, %v1657_v32  ;;  %v1275_v7 = vpop.f32.mrf.mxu0 }
 0x56d   : > { %v1307_v26 = vpack.c.bf16 %v1275_v7, %v1272_v5 }
 0x56e   : > { %v1662_v34 = vmul.f32 1.442695, %v1659_v33  ;;  %v2546_v8 = vpop.f32.mrf.mxu0 }
 0x570   : > { %2793 = vpow2.f32 %v1662_v34  ;;  %v1305_v34 = vpack.c.bf16 %v1259_v2, %v1256_v0 }
 0x574   : > { %v949_v35 = vpop.xlane.xlu1 %948 }
 0x575   : > { %v952_v36 = vadd.f32 1e-16, %v949_v35 }
 0x577   : > { %2795 = vrcp.f32 %v952_v36 }
 0x578   : > { %v951_v37 = vpop.xlane.xlu1 %950 }
 0x579   : > { %v953_v38 = vadd.f32 1e-16, %v951_v37  ;;  %v1304_v37 = vpack.c.bf16 %v2535_v61, %v3420_v55 }
 0x57b   : > { %2797 = vrcp.f32 %v953_v38 }
 0x57c   : > { %v1430_v50 = vpop.xlane.xlu1 %1429 }
 0x57d   : > { %v2794_v39 = vpop.eup %2793  ;;  %v1432_v15 = vadd.f32 1e-16, %v1430_v50 }
 0x57e   : > { %v3402_v9 = vsel %vm3320_vm7, %v2794_v39, 0.0  ;;  %v1303_v39 = vpack.c.bf16 %v1243_v62, %v3430_v60 }
 0x57f   : > { %1668 = vadd.xlane.f32.xlu1 %v3402_v9  ;;  %2799 = vrcp.f32 %v1432_v15 }
 0x584   : > { %v2796_v47 = vpop.eup %2795 }
 0x585   : > { %v3405_v40 = vmul.f32 %v2796_v47, %v946_v11  ;;  %v1288_v11 = vpop.f32.mrf.mxu0 }
 0x587   : > { %v965_v45 = vmul.f32 %v3347_v21, %v3405_v40 }
 0x588   : > { %v2798_v43 = vpop.eup %2797 }
 0x589   : > { %v3407_v44 = vmul.f32 %v2798_v43, %v947_v13  ;;  %v2547_v13 = vpop.f32.mrf.mxu0 }
 0x58a   : > { %v1310_v42 = vpack.c.bf16 %v2547_v13, %v2546_v8 }
 0x58b   : > { %v966_v46 = vmul.f32 %v3347_v21, %v3407_v44  ;;  %v958_v49 = vpack.c.bf16 %v3407_v44, %v3405_v40  ;;  %v1291_v16 = vpop.f32.mrf.mxu0 }
 0x58c   : > { %v2800_v52 = vpop.eup %2799  ;;  %v1309_v17 = vpack.c.bf16 %v1291_v16, %v1288_v11 }
 0x58d   : > { %v967_v48 = vpack.c.bf16 %v966_v46, %v965_v45  ;;  %v3418_v53 = vmul.f32 %v2800_v52, %v1426_v14 }
 0x58f   : > { %969 = vxpose.xlu0.c.b16.start.end [1/1] (short) %v967_v48, 128  ;;  %v1439_v58 = vmul.f32 %v3347_v21, %v3418_v53 }
 0x590   : > { %1457 = vrot.lane.b32.xlu1 %v3302_v24, %s2982_s22 }
 0x598   : > { %2764 = vset.pattern.permute.xlu0 %v2978_v19 }
 0x5a9   : > { %v1428_v41 = vpop.xlane.xlu0 %1427 }
 0x5aa   : > { %v1431_v51 = vadd.f32 1e-16, %v1428_v41 }
 0x5ac   : > { %2801 = vrcp.f32 %v1431_v51 }
 0x5b4   : > { %1696 = vrot.lane.b32.xlu0 %v3302_v24, %s2983_s25  ;;  %s3685_s25 = scalar_lea.vmem [#allocation7], %s3218_s20 }
 0x5b5   : > { %s3686_s17 = smov %s3685_s25 }
 0x5b9   : > { %v2802_v54 = vpop.eup %2801 }
 0x5ba   : > { %v3422_v56 = vmul.f32 %v2802_v54, %v1425_v22 }
 0x5bc   : > { %v1438_v57 = vmul.f32 %v3347_v21, %v3422_v56  ;;  %v1437_v59 = vpack.c.bf16 %v3418_v53, %v3422_v56 }
 0x5be   : > { %v1440_v24 = vpack.c.bf16 %v1439_v58, %v1438_v57 }
 0x5c0   : > { %1441 = vxpose.xlu1.c.b16.start.end [1/1] (short) %v1440_v24, 128 }
 0x5da   : > { %v1667_v10 = vpop.xlane.xlu0 %1666 }
 0x5db   : > { %v1670_v29 = vadd.f32 1e-16, %v1667_v10 }
 0x5dd   : > { %2803 = vrcp.f32 %v1670_v29 }
 0x5ea   : > { %v2804_v43 = vpop.eup %2803 }
 0x5eb   : > { %v3455_v45 = vmul.f32 %v2804_v43, %v3397_v31 }
 0x5ed   : > { %v1677_v50 = vmul.f32 %v3347_v21, %v3455_v45 }
 0x5f1   : > { %v977_v12 = vpop.trf.xlu0 }
 0x5f2   : > { %2514 = vmatprep.mubr.msk.bf16.mxu1 %vm862_vm3, %v977_v12 }
 0x5f5   : > { %v978_v14 = vpop.trf.xlu0 }
 0x5f6   : > { %2515 = vmatmul.mubr.msk.bf16.vlgmr.msra.gmra.mxu1 %vm862_vm3, %v978_v14 }
 0x5f7   : > { %2549 = vmatpush3.bf16.msra.mxu1 %v1310_v42 }
 0x5f8   : > { %2550 = vmatprep.subr.bf16.mxu1 %v2974_v3 }
 0x5f9   : > { %v979_v18 = vpop.trf.xlu0 }
 0x5fa   : > { %2518 = vmatprep.mubr.msk.bf16.mxu1 %vm862_vm3, %v979_v18 }
 0x5fb   : > { %2551 = vmatpush3.bf16.msra.mxu1 %v1309_v17 }
 0x5fc   : > { %2552 = vmatprep.subr.bf16.mxu1 %v2974_v3 }
 0x5fd   : > { %v980_v22 = vpop.trf.xlu0 }
 0x5fe   : > { %2519 = vmatmul.mubr.msk.bf16.gmra.mxu1 %vm862_vm3, %v980_v22 }
 0x5ff   : > { %2553 = vmatpush3.bf16.msra.mxu1 %v1308_v20 }
 0x600   : > { %2554 = vmatprep.subr.bf16.mxu1 %v2974_v3 }
 0x601   : > { %v981_v27 = vpop.trf.xlu0 }
 0x602   : > { %2522 = vmatprep.mubr.msk.bf16.mxu1 %vm862_vm3, %v981_v27 }
 0x603   : > { %2555 = vmatpush3.bf16.msra.mxu1 %v1307_v26 }
 0x604   : > { %2556 = vmatprep.subr.bf16.mxu1 %v2974_v3 }
 0x605   : > { %v982_v32 = vpop.trf.xlu0 }
 0x606   : > { %2523 = vmatmul.mubr.msk.bf16.gmra.mxu1 %vm862_vm3, %v982_v32 }
 0x607   : > { %2557 = vmatpush3.bf16.msra.mxu1 %v1306_v30 }
 0x608   : > { %v1669_v33 = vpop.xlane.xlu1 %1668  ;;  %2558 = vmatprep.subr.bf16.mxu1 %v2974_v3 }
 0x609   : > { %v1671_v35 = vadd.f32 1e-16, %v1669_v33  ;;  %v983_v36 = vpop.trf.xlu0 }
 0x60a   : > { %2526 = vmatprep.mubr.msk.bf16.mxu1 %vm862_vm3, %v983_v36 }
 0x60b   : > { %2805 = vrcp.f32 %v1671_v35  ;;  %2559 = vmatpush3.bf16.msra.mxu1 %v1305_v34 }
 0x60c   : > { %2560 = vmatprep.subr.bf16.mxu1 %v2974_v3  ;;  %v1458_v47 = vpop.permute.xlu1 %1457 }
 0x60d   : > { %v984_v38 = vpop.trf.xlu0 }
 0x60e   : > { %2527 = vmatmul.mubr.msk.bf16.gmra.mxu1 %vm862_vm3, %v984_v38 }
 0x60f   : > { %2561 = vmatpush3.bf16.msra.mxu1 %v1304_v37  ;;  %2564 = vmatprep.mubr.msk.bf16.mxu1 %vm2975_vm1, %v2974_v3 }
 0x610   : > { %2562 = vmatprep.subr.bf16.mxu1 %v2974_v3 }
 0x613   : > { %2563 = vmatpush3.bf16.msra.mxu1 %v1303_v39 }
 0x614   : > { %2588 = vmatprep.subr.bf16.mxu1 %v1458_v47 }
 0x616   : > { %2565 = vmatmul.mubr.bf16.vlgmr.msra.gmra.mxu1 %v1158_v28 }
 0x617   : > { %2589 = vmatpush3.bf16.msra.mxu1 %v1458_v47 }
 0x618   : > { %v2806_v46 = vpop.eup %2805 }
 0x619   : > { %v3458_v48 = vmul.f32 %v2806_v46, %v3402_v9 }
 0x61b   : > { %v1678_v15 = vmul.f32 %v3347_v21, %v3458_v48  ;;  %v1676_v41 = vpack.c.bf16 %v3458_v48, %v3455_v45 }
 0x61d   : > { %v1679_v51 = vpack.c.bf16 %v1678_v15, %v1677_v50 }
 0x61f   : > { %1680 = vxpose.xlu1.c.b16.start.end [1/1] (short) %v1679_v51, 128 }
 0x622   : > { %v1449_v23 = vpop.trf.xlu1 }
 0x623   : > { %2590 = vmatprep.mubr.msk.bf16.mxu1 %vm862_vm3, %v1449_v23  ;;  %2765 = vset.pattern.permute.xlu1 %v2978_v19 }
 0x626   : > { %v1697_v25 = vpop.permute.xlu0 %1696  ;;  %v1450_v28 = vpop.trf.xlu1 }
 0x627   : > { %2591 = vmatmul.mubr.msk.bf16.vlgmr.msra.gmra.mxu1 %vm862_vm3, %v1450_v28  ;;  %2626 = vmatprep.subr.bf16.mxu1 %v1697_v25 }
 0x628   : > { %2627 = vmatpush3.bf16.msra.mxu1 %v1697_v25 }
 0x629   : > { %2664 = vmatprep.subr.bf16.mxu1 %v2974_v3 }
 0x62a   : > { %v1451_v31 = vpop.trf.xlu1 }
 0x62b   : > { %2594 = vmatprep.mubr.msk.bf16.mxu1 %vm862_vm3, %v1451_v31 }
 0x62e   : > { %v1452_v21 = vpop.trf.xlu1 }
 0x62f   : > { %2595 = vmatmul.mubr.msk.bf16.gmra.mxu1 %vm862_vm3, %v1452_v21 }
 0x632   : > { %v1453_v9 = vpop.trf.xlu1 }
 0x633   : > { %2598 = vmatprep.mubr.msk.bf16.mxu1 %vm862_vm3, %v1453_v9 }
 0x636   : > { %v1454_v52 = vpop.trf.xlu1 }
 0x637   : > { %2599 = vmatmul.mubr.msk.bf16.gmra.mxu1 %vm862_vm3, %v1454_v52 }
 0x63a   : > { %v1455_v19 = vpop.trf.xlu1 }
 0x63b   : > { %2602 = vmatprep.mubr.msk.bf16.mxu1 %vm862_vm3, %v1455_v19 }
 0x63e   : > { %v1456_v54 = vpop.trf.xlu1 }
 0x63f   : > { %2603 = vmatmul.mubr.msk.bf16.gmra.mxu1 %vm862_vm3, %v1456_v54 }
 0x681   : > { %v1688_v55 = vpop.trf.xlu1 }
 0x682   : > { %2628 = vmatprep.mubr.msk.bf16.mxu1 %vm862_vm3, %v1688_v55 }
 0x685   : > { %v1689_v57 = vpop.trf.xlu1 }
 0x686   : > { %2629 = vmatmul.mubr.msk.bf16.vlgmr.msra.gmra.mxu1 %vm862_vm3, %v1689_v57 }
 0x689   : > { %v1690_v58 = vpop.trf.xlu1 }
 0x68a   : > { %2632 = vmatprep.mubr.msk.bf16.mxu1 %vm862_vm3, %v1690_v58 }
 0x68d   : > { %v1691_v60 = vpop.trf.xlu1 }
 0x68e   : > { %2633 = vmatmul.mubr.msk.bf16.gmra.mxu1 %vm862_vm3, %v1691_v60  ;;  %v713_v60 = vld [vmem:[%s3682_s4] sm:$0xff] }
 0x68f   : > { %1873 = vperm.xlu0 %2764, %v713_v60  }
 0x691   : > { %v1692_v24 = vpop.trf.xlu1 }
 0x692   : > { %2636 = vmatprep.mubr.msk.bf16.mxu1 %vm862_vm3, %v1692_v24  ;;  %v714_v24 = vld [vmem:[%s3682_s4 + $0x8] sm:$0xff] }
 0x693   : > { %1878 = vperm.xlu1 %2765, %v714_v24  }
 0x695   : > { %v1693_v61 = vpop.trf.xlu1 }
 0x696   : > { %2637 = vmatmul.mubr.msk.bf16.gmra.mxu1 %vm862_vm3, %v1693_v61 }
 0x699   : > { %v1694_v62 = vpop.trf.xlu1 }
 0x69a   : > { %2640 = vmatprep.mubr.msk.bf16.mxu1 %vm862_vm3, %v1694_v62 }
 0x69d   : > { %v1695_v63 = vpop.trf.xlu1 }
 0x69e   : > { %2641 = vmatmul.mubr.msk.bf16.gmra.mxu1 %vm862_vm3, %v1695_v63 }
 0x69f   : > { %2668 = vmatprep.mubr.msk.bf16.mxu1 %vm2975_vm1, %v2974_v3 }
 0x6b6   : > { %v2516_v0 = vpop.f32.mrf.mxu1 }
 0x6b8   : > { %v1043_v1 = vpop.f32.mrf.mxu1 }
 0x6ba   : > { %v2517_v2 = vpop.f32.mrf.mxu1 }
 0x6bb   : > { %v1107_v36 = vpack.c.bf16 %v2517_v2, %v2516_v0 }
 0x6bc   : > { %v1046_v4 = vpop.f32.mrf.mxu1 }
 0x6bd   : > { %v1106_v39 = vpack.c.bf16 %v1046_v4, %v1043_v1 }
 0x6be   : > { %v2520_v5 = vpop.f32.mrf.mxu1 }
 0x6c0   : > { %v1059_v6 = vpop.f32.mrf.mxu1 }
 0x6c2   : > { %v2521_v7 = vpop.f32.mrf.mxu1 }
 0x6c3   : > { %v1109_v33 = vpack.c.bf16 %v2521_v7, %v2520_v5 }
 0x6c4   : > { %v1062_v8 = vpop.f32.mrf.mxu1 }
 0x6c5   : > { %v1108_v34 = vpack.c.bf16 %v1062_v8, %v1059_v6 }
 0x6c6   : > { %v2524_v10 = vpop.f32.mrf.mxu1 }
 0x6c8   : > { %v1075_v11 = vpop.f32.mrf.mxu1 }
 0x6ca   : > { %v2525_v12 = vpop.f32.mrf.mxu1 }
 0x6cb   : > { %v1111_v27 = vpack.c.bf16 %v2525_v12, %v2524_v10 }
 0x6cc   : > { %v1078_v13 = vpop.f32.mrf.mxu1 }
 0x6cd   : > { %v1110_v32 = vpack.c.bf16 %v1078_v13, %v1075_v11 }
 0x6ce   : > { %v2528_v42 = vpop.f32.mrf.mxu1 }
 0x6d0   : > { %v1091_v14 = vpop.f32.mrf.mxu1 }
 0x6d2   : > { %v2529_v16 = vpop.f32.mrf.mxu1 }
 0x6d3   : > { %v1113_v17 = vpack.c.bf16 %v2529_v16, %v2528_v42 }
 0x6d4   : > { %v1094_v18 = vpop.f32.mrf.mxu1 }
 0x6d5   : > { %v1112_v20 = vpack.c.bf16 %v1094_v18, %v1091_v14  ;;  %2569 = vmatpush3.bf16.msra.mxu0 %v1113_v17 }
 0x6d6   : > { %v3486_v22 = vpop.f32.mrf.mxu1  ;;  %2570 = vmatprep.subr.bf16.mxu0 %v2974_v3 }
 0x6d8   : > { %v2566_v26 = vpop.f32.mrf.mxu1 }
 0x6d9   : > { %2571 = vmatpush3.bf16.msra.mxu0 %v1112_v20 }
 0x6da   : > { %v3489_v29 = vpop.f32.mrf.mxu1  ;;  %2572 = vmatprep.subr.bf16.mxu0 %v2974_v3 }
 0x6dc   : > { %v2567_v30 = vpop.f32.mrf.mxu1 }
 0x6dd   : > { %2573 = vmatpush3.bf16.msra.mxu0 %v1111_v27 }
 0x6de   : > { %2574 = vmatprep.subr.bf16.mxu0 %v2974_v3 }
 0x6e1   : > { %2575 = vmatpush3.bf16.msra.mxu0 %v1110_v32 }
 0x6e2   : > { %2576 = vmatprep.subr.bf16.mxu0 %v2974_v3 }
 0x6e5   : > { %2577 = vmatpush3.bf16.msra.mxu0 %v1109_v33 }
 0x6e6   : > { %2578 = vmatprep.subr.bf16.mxu0 %v2974_v3 }
 0x6e7   : > { %v2592_v35 = vpop.f32.mrf.mxu1 }
 0x6e9   : > { %2579 = vmatpush3.bf16.msra.mxu0 %v1108_v34  ;;  %v1518_v37 = vpop.f32.mrf.mxu1 }
 0x6ea   : > { %2580 = vmatprep.subr.bf16.mxu0 %v2974_v3 }
 0x6eb   : > { %v2593_v38 = vpop.f32.mrf.mxu1 }
 0x6ec   : > { %v1582_v57 = vpack.c.bf16 %v2593_v38, %v2592_v35 }
 0x6ed   : > { %2581 = vmatpush3.bf16.msra.mxu0 %v1107_v36  ;;  %v1521_v47 = vpop.f32.mrf.mxu1 }
 0x6ee   : > { %2582 = vmatprep.subr.bf16.mxu0 %v2974_v3  ;;  %v1581_v58 = vpack.c.bf16 %v1521_v47, %v1518_v37 }
 0x6ef   : > { %v2596_v43 = vpop.f32.mrf.mxu1 }
 0x6f1   : > { %2583 = vmatpush3.bf16.msra.mxu0 %v1106_v39  ;;  %v1534_v46 = vpop.f32.mrf.mxu1 }
 0x6f2   : > { %2606 = vmatprep.subr.bf16.mxu0 %v2974_v3 }
 0x6f3   : > { %v2597_v50 = vpop.f32.mrf.mxu1 }
 0x6f4   : > { %2585 = vmatmul.mubr.bf16.vlgmr.msra.gmra.mxu0 %v958_v49  ;;  %v1584_v44 = vpack.c.bf16 %v2597_v50, %v2596_v43  ;;  %v2382_v43 = vld [vmem:[%s3683_s29] ss:$0 sm:$0xff] }
 0x6f5   : > { %v1537_v15 = vpop.f32.mrf.mxu1  ;;  %2622 = vmatprep.mubr.msk.bf16.mxu0 %vm2975_vm1, %v2974_v3 }
 0x6f6   : > { %v1583_v49 = vpack.c.bf16 %v1537_v15, %v1534_v46 }
 0x6f7   : > { %v2600_v51 = vpop.f32.mrf.mxu1 }
 0x6f9   : > { %v1550_v23 = vpop.f32.mrf.mxu1 }
 0x6fb   : > { %v2601_v25 = vpop.f32.mrf.mxu1 }
 0x6fc   : > { %v1586_v55 = vpack.c.bf16 %v2601_v25, %v2600_v51 }
 0x6fd   : > { %v1553_v28 = vpop.f32.mrf.mxu1 }
 0x6fe   : > { %v1585_v40 = vpack.c.bf16 %v1553_v28, %v1550_v23  ;;  %v3542_v28 = vld [vmem:[#allocation2] sm:$0xff] }
 0x6ff   : > { %v2604_v31 = vpop.f32.mrf.mxu1 }
 0x701   : > { %v1566_v21 = vpop.f32.mrf.mxu1 }
 0x703   : > { %v2605_v9 = vpop.f32.mrf.mxu1 }
 0x704   : > { %v1588_v52 = vpack.c.bf16 %v2605_v9, %v2604_v31 }
 0x705   : > { %v1569_v19 = vpop.f32.mrf.mxu1 }
 0x706   : > { %2607 = vmatpush3.bf16.msra.mxu0 %v1588_v52  ;;  %v1587_v54 = vpack.c.bf16 %v1569_v19, %v1566_v21  ;;  %v3546_v52 = vld [vmem:[#allocation2 + $0x8] sm:$0xff] }
 0x707   : > { %2608 = vmatprep.subr.bf16.mxu0 %v2974_v3 }
 0x70a   : > { %2609 = vmatpush3.bf16.msra.mxu0 %v1587_v54  ;;  %v1874_v48 = vpop.permute.xlu0 %1873 }
 0x70b   : > { %2610 = vmatprep.subr.bf16.mxu0 %v2974_v3 }
 0x70e   : > { %2611 = vmatpush3.bf16.msra.mxu0 %v1586_v55  ;;  %v1879_v15 = vpop.permute.xlu1 %1878  ;;  %v2771_v55 = vld [vmem:[%s3253_s27 + $0x8] sm:$0xff]  }
 0x70f   : > { %2612 = vmatprep.subr.bf16.mxu0 %v2974_v3  ;;  %2665 = vmatpush3.bf16.msra.mxu1 %v2771_v55 }
 0x710   : > { %2666 = vmatprep.subr.bf16.mxu1 %v2974_v3 }
 0x712   : > { %2613 = vmatpush3.bf16.msra.mxu0 %v1585_v40 }
 0x713   : > { %2614 = vmatprep.subr.bf16.mxu0 %v2974_v3 }
 0x716   : > { %2615 = vmatpush3.bf16.msra.mxu0 %v1584_v44 }
 0x717   : > { %2616 = vmatprep.subr.bf16.mxu0 %v2974_v3 }
 0x71a   : > { %2617 = vmatpush3.bf16.msra.mxu0 %v1583_v49 }
 0x71b   : > { %2618 = vmatprep.subr.bf16.mxu0 %v2974_v3 }
 0x71e   : > { %2619 = vmatpush3.bf16.msra.mxu0 %v1582_v57 }
 0x71f   : > { %2620 = vmatprep.subr.bf16.mxu0 %v2974_v3 }
 0x722   : > { %2621 = vmatpush3.bf16.msra.mxu0 %v1581_v58 }
 0x723   : > { %2644 = vmatprep.subr.bf16.mxu0 %v2974_v3 }
 0x725   : > { %2623 = vmatmul.mubr.bf16.vlgmr.msra.gmra.mxu0 %v1437_v59 }
 0x726   : > { %2660 = vmatprep.mubr.msk.bf16.mxu0 %vm2975_vm1, %v2974_v3 }
 0x746   : > { %v2630_v61 = vpop.f32.mrf.mxu1 }
 0x748   : > { %v1757_v62 = vpop.f32.mrf.mxu1 }
 0x74a   : > { %v2631_v63 = vpop.f32.mrf.mxu1 }
 0x74b   : > { %v1821_v18 = vpack.c.bf16 %v2631_v63, %v2630_v61 }
 0x74c   : > { %v1760_v0 = vpop.f32.mrf.mxu1 }
 0x74d   : > { %v1820_v20 = vpack.c.bf16 %v1760_v0, %v1757_v62  ;;  %v2772_v0 = vld [vmem:[%s3253_s27] sm:$0xff]  }
 0x74e   : > { %v2634_v1 = vpop.f32.mrf.mxu1  ;;  %2667 = vmatpush3.bf16.msra.mxu1 %v2772_v0  ;;  %v2394_v0 = vld [vmem:[%s690_s11] ss:$0 sm:$0xff] }
 0x750   : > { %v1773_v53 = vpop.f32.mrf.mxu1 }
 0x752   : > { %v2635_v56 = vpop.f32.mrf.mxu1 }
 0x753   : > { %v1823_v16 = vpack.c.bf16 %v2635_v56, %v2634_v1 }
 0x754   : > { %v1776_v59 = vpop.f32.mrf.mxu1 }
 0x755   : > { %v1822_v17 = vpack.c.bf16 %v1776_v59, %v1773_v53 }
 0x756   : > { %v2638_v2 = vpop.f32.mrf.mxu1 }
 0x758   : > { %v1789_v4 = vpop.f32.mrf.mxu1 }
 0x75a   : > { %v2639_v5 = vpop.f32.mrf.mxu1 }
 0x75b   : > { %v1825_v42 = vpack.c.bf16 %v2639_v5, %v2638_v2 }
 0x75c   : > { %v1792_v6 = vpop.f32.mrf.mxu1 }
 0x75d   : > { %v1824_v14 = vpack.c.bf16 %v1792_v6, %v1789_v4 }
 0x75e   : > { %v2642_v7 = vpop.f32.mrf.mxu1 }
 0x760   : > { %v1805_v8 = vpop.f32.mrf.mxu1 }
 0x762   : > { %v2643_v10 = vpop.f32.mrf.mxu1 }
 0x763   : > { %v1827_v11 = vpack.c.bf16 %v2643_v10, %v2642_v7  ;;  %v2383_v7 = vld [vmem:[%s3684_s16] ss:$0 sm:$0xff] }
 0x764   : > { %v1808_v12 = vpop.f32.mrf.mxu1 }
 0x765   : > { %2645 = vmatpush3.bf16.msra.mxu0 %v1827_v11  ;;  %v1826_v13 = vpack.c.bf16 %v1808_v12, %v1805_v8  ;;  %v2384_v12 = vld [vmem:[%s676_s0] ss:$0 sm:$0xff] }
 0x766   : > { %2646 = vmatprep.subr.bf16.mxu0 %v2974_v3 }
 0x769   : > { %2647 = vmatpush3.bf16.msra.mxu0 %v1826_v13 }
 0x76a   : > { %2648 = vmatprep.subr.bf16.mxu0 %v2974_v3 }
 0x76d   : > { %2649 = vmatpush3.bf16.msra.mxu0 %v1825_v42 }
 0x76e   : > { %2650 = vmatprep.subr.bf16.mxu0 %v2974_v3 }
 0x771   : > { %2651 = vmatpush3.bf16.msra.mxu0 %v1824_v14 }
 0x772   : > { %2652 = vmatprep.subr.bf16.mxu0 %v2974_v3 }
 0x775   : > { %2653 = vmatpush3.bf16.msra.mxu0 %v1823_v16 }
 0x776   : > { %2654 = vmatprep.subr.bf16.mxu0 %v2974_v3 }
 0x779   : > { %2655 = vmatpush3.bf16.msra.mxu0 %v1822_v17  ;;  %v2773_v17 = vld [vmem:[%s3685_s25 + $0x8] sm:$0xff]  }
 0x77a   : > { %2656 = vmatprep.subr.bf16.mxu0 %v2974_v3 }
 0x77d   : > { %2657 = vmatpush3.bf16.msra.mxu0 %v1821_v18  ;;  %v2774_v18 = vld [vmem:[%s3686_s17] sm:$0xff]  }
 0x77e   : > { %2658 = vmatprep.subr.bf16.mxu0 %v2974_v3 }
 0x781   : > { %2659 = vmatpush3.bf16.msra.mxu0 %v1820_v20 }
 0x782   : > { %2672 = vmatprep.subr.bf16.mxu0 %v2974_v3 }
 0x784   : > { %2661 = vmatmul.mubr.bf16.vlgmr.msra.gmra.mxu0 %v1676_v41 }
 0x785   : > { %2676 = vmatprep.mubr.msk.bf16.mxu0 %vm2975_vm1, %v2974_v3  ;;  %2673 = vmatpush3.bf16.msra.mxu0 %v2773_v17 }
 0x786   : > { %2674 = vmatprep.subr.bf16.mxu0 %v2974_v3 }
 0x789   : > { %2675 = vmatpush3.bf16.msra.mxu0 %v2774_v18 }
 0x7b4   : > { %v1386_v26 = vpop.f32.mrf.mxu0 }
 0x7b5   : > { %v1387_v33 = vadd.f32 %v1386_v26, %v3486_v22  ;;  %v2385_v26 = vld [vmem:[%s684_s28] ss:$0 sm:$0xff] }
 0x7b6   : > { %v2586_v27 = vpop.f32.mrf.mxu0 }
 0x7b8   : > { %v1389_v30 = vpop.f32.mrf.mxu0 }
 0x7b9   : > { %v1390_v37 = vadd.f32 %v1389_v30, %v3489_v29 }
 0x7ba   : > { %v2587_v32 = vpop.f32.mrf.mxu0 }
 0x7e5   : > { %v1623_v34 = vpop.f32.mrf.mxu0 }
 0x7e6   : > { %v1630_v35 = vadd.f32 %v1623_v34, %v1387_v33 }
 0x7e7   : > { %v2624_v36 = vpop.f32.mrf.mxu0 }
 0x7e8   : > { %v2389_v36 = vld [vmem:[%s3267_s1] ss:$0 sm:$0xff] }
 0x7e9   : > { %v1626_v38 = vpop.f32.mrf.mxu0 }
 0x7ea   : > { %v1631_v39 = vadd.f32 %v1626_v38, %v1390_v37 }
 0x7eb   : > { %v2625_v47 = vpop.f32.mrf.mxu0 }
 0x844   : > { %v1862_v45 = vpop.f32.mrf.mxu0 }
 0x845   : > { %v1869_v41 = vadd.f32 %v1862_v45, %v1630_v35 }
 0x846   : > { %v2662_v46 = vpop.f32.mrf.mxu0 }
 0x847   : > { %v1881_v50 = vmul.f32 %v1874_v48, %v1869_v41 }
 0x848   : > { %v1865_v22 = vpop.f32.mrf.mxu0 }
 0x849   : > { %v1890_v51 = vadd.f32 %v2382_v43, %v1881_v50  ;;  %v1870_v23 = vadd.f32 %v1865_v22, %v1631_v39 }
 0x84a   : > { %v2663_v25 = vpop.f32.mrf.mxu0 }
 0x84b   : > { %v1882_v29 = vmul.f32 %v1879_v15, %v1870_v23  ;;  %v1892_v31 = vadd.f32 %v3542_v28, %v1890_v51 }
 0x84d   : > { %v1891_v21 = vadd.f32 %v2382_v43, %v1882_v29  ;;  %v1894_v9 = vsel %vm733_vm2, %v1892_v31, 0.0 }
 0x84e   : > { %1895 = vadd.xlane.f32.xlu0 %v1894_v9 }
 0x84f   : > { %v1893_v19 = vadd.f32 %v3546_v52, %v1891_v21 }
 0x851   : > { %v1897_v54 = vsel %vm733_vm2, %v1893_v19, 0.0 }
 0x852   : > { %1898 = vadd.xlane.f32.xlu1 %v1897_v54 }
 0x8d7   : > { %v1896_v40 = vpop.xlane.xlu0 %1895 }
 0x8d8   : > { %v1901_v44 = vmul.f32 0.03125, %v1896_v40 }
 0x8da   : > { %v1903_v49 = vsub.f32 %v1892_v31, %v1901_v44 }
 0x8db   : > { %v1899_v57 = vpop.xlane.xlu1 %1898 }
 0x8dc   : > { %v1902_v58 = vmul.f32 0.03125, %v1899_v57  ;;  %v1905_v60 = vmul.f32 %v1903_v49, %v1903_v49 }
 0x8de   : > { %v1904_v24 = vsub.f32 %v1893_v19, %v1902_v58  ;;  %v1907_v61 = vsel %vm733_vm2, %v1905_v60, 0.0 }
 0x8df   : > { %1908 = vadd.xlane.f32.xlu0 %v1907_v61 }
 0x8e0   : > { %v1906_v62 = vmul.f32 %v1904_v24, %v1904_v24 }
 0x8e2   : > { %v1910_v63 = vsel %vm733_vm2, %v1906_v62, 0.0  ;;  %v2393_v62 = vld [vmem:[%s687_s24] ss:$0 sm:$0xff] }
 0x8e3   : > { %1911 = vadd.xlane.f32.xlu0 %v1910_v63 }
 0x968   : > { %v1909_v1 = vpop.xlane.xlu0 %1908 }
 0x969   : > { %v1913_v53 = vmul.f32 0.03125, %v1909_v1 }
 0x96b   : > { %v1915_v56 = vadd.f32 1e-05, %v1913_v53 }
 0x96c   : > { %v1912_v59 = vpop.xlane.xlu0 %1911 }
 0x96d   : > { %2807 = vrsqrt.f32 %v1915_v56  ;;  %v1914_v2 = vmul.f32 0.03125, %v1912_v59 }
 0x96f   : > { %v1916_v4 = vadd.f32 1e-05, %v1914_v2  ;;  %v2129_v2 = vld [vmem:[#allocation3] sm:$0xff] }
 0x971   : > { %2809 = vrsqrt.f32 %v1916_v4 }
 0x97a   : > { %v2808_v5 = vpop.eup %2807 }
 0x97b   : > { %v1919_v6 = vmul.f32 %v2808_v5, %v1903_v49 }
 0x97d   : > { %v1928_v10 = vmul.f32 %v2383_v7, %v1919_v6 }
 0x97e   : > { %v2810_v8 = vpop.eup %2809 }
 0x97f   : > { %v1920_v11 = vmul.f32 %v2810_v8, %v1904_v24  ;;  %v1937_v42 = vadd.f32 %v2384_v12, %v1928_v10  ;;  %v2130_v8 = vld [vmem:[#allocation3 + $0x8] sm:$0xff] }
 0x981   : > { %v1929_v13 = vmul.f32 %v2383_v7, %v1920_v11 }
 0x983   : > { %v1938_v14 = vadd.f32 %v2384_v12, %v1929_v13 }
 0x985   : > { %v1939_v16 = vpack.c.bf16 %v1938_v14, %v1937_v42 }
 0x987   : > { %2669 = vmatmul.mubr.msk.bf16.vlgmr.msra.gmra.mxu1 %vm733_vm2, %v1939_v16 }
 0xa47   : > { %v2000_v20 = vpop.f32.mrf.mxu1 }
 0xa48   : > { %v2001_v32 = vadd.f32 %v2385_v26, %v2000_v20 }
 0xa49   : > { %v2670_v27 = vpop.f32.mrf.mxu1 }
 0xa4b   : > { %v2003_v30 = vpop.f32.mrf.mxu1 }
 0xa4c   : > { %v2004_v33 = vadd.f32 %v2385_v26, %v2003_v30 }
 0xa4d   : > { %v2671_v34 = vpop.f32.mrf.mxu1 }
 0xa4e   : > { %v2007_v35 = vpack.c.bf16 %v2004_v33, %v2001_v32 }
 0xa50   : > { %2677 = vmatmul.mubr.msk.bf16.vlgmr.msra.gmra.mxu0 %vm733_vm2, %v2007_v35 }
 0xb10   : > { %v2068_v37 = vpop.f32.mrf.mxu0 }
 0xb11   : > { %v2069_v3 = vadd.f32 %v2389_v36, %v2068_v37 }
 0xb12   : > { %v2678_v38 = vpop.f32.mrf.mxu0 }
 0xb13   : > { %vm2075_vm0 = vcmp.ge.f32.partialorder %v2069_v3, 0.0  ;;  %v2077_v39 = vmul.f32 0.01, %v2069_v3 }
 0xb14   : > { %v2071_v47 = vpop.f32.mrf.mxu0 }
 0xb15   : > { %v2072_v45 = vadd.f32 %v2389_v36, %v2071_v47  ;;  %v2079_v48 = vsel %vm2075_vm0, %v2069_v3, %v2077_v39 }
 0xb16   : > { %v2679_v41 = vpop.f32.mrf.mxu0  ;;  %v2081_v43 = vadd.f32 %v2079_v48, %v1937_v42 }
 0xb17   : > { %vm2076_vm1 = vcmp.ge.f32.partialorder %v2072_v45, 0.0  ;;  %v2078_v46 = vmul.f32 0.01, %v2072_v45 }
 0xb18   : > { %v2083_v50 = vsel %vm733_vm2, %v2081_v43, 0.0 }
 0xb19   : > { %2084 = vadd.xlane.f32.xlu0 %v2083_v50  ;;  %v2080_v22 = vsel %vm2076_vm1, %v2072_v45, %v2078_v46 }
 0xb1a   : > { %v2082_v15 = vadd.f32 %v2080_v22, %v1938_v14 }
 0xb1c   : > { %v2086_v51 = vsel %vm733_vm2, %v2082_v15, 0.0 }
 0xb1d   : > { %2087 = vadd.xlane.f32.xlu0 %v2086_v51 }
 0xba2   : > { %v2085_v23 = vpop.xlane.xlu0 %2084 }
 0xba3   : > { %v2089_v25 = vmul.f32 0.03125, %v2085_v23 }
 0xba5   : > { %v2091_v29 = vsub.f32 %v2081_v43, %v2089_v25 }
 0xba6   : > { %v2088_v31 = vpop.xlane.xlu0 %2087 }
 0xba7   : > { %v2090_v21 = vmul.f32 0.03125, %v2088_v31  ;;  %v2093_v9 = vmul.f32 %v2091_v29, %v2091_v29 }
 0xba9   : > { %v2092_v19 = vsub.f32 %v2082_v15, %v2090_v21  ;;  %v2095_v54 = vsel %vm733_vm2, %v2093_v9, 0.0 }
 0xbaa   : > { %2096 = vadd.xlane.f32.xlu0 %v2095_v54 }
 0xbab   : > { %v2094_v55 = vmul.f32 %v2092_v19, %v2092_v19 }
 0xbad   : > { %v2098_v40 = vsel %vm733_vm2, %v2094_v55, 0.0 }
 0xbae   : > { %2099 = vadd.xlane.f32.xlu0 %v2098_v40 }
 0xc33   : > { %v2097_v44 = vpop.xlane.xlu0 %2096 }
 0xc34   : > { %v2101_v49 = vmul.f32 0.03125, %v2097_v44 }
 0xc36   : > { %v2103_v57 = vadd.f32 1e-05, %v2101_v49 }
 0xc37   : > { %v2100_v58 = vpop.xlane.xlu0 %2099 }
 0xc38   : > { %2811 = vrsqrt.f32 %v2103_v57  ;;  %v2102_v60 = vmul.f32 0.03125, %v2100_v58 }
 0xc3a   : > { %v2104_v24 = vadd.f32 1e-05, %v2102_v60 }
 0xc3c   : > { %2813 = vrsqrt.f32 %v2104_v24 }
 0xc45   : > { %v2812_v61 = vpop.eup %2811 }
 0xc46   : > { %v2107_v63 = vmul.f32 %v2812_v61, %v2091_v29 }
 0xc48   : > { %v2116_v1 = vmul.f32 %v2393_v62, %v2107_v63 }
 0xc49   : > { %v2814_v53 = vpop.eup %2813 }
 0xc4a   : > { %v2125_v56 = vadd.f32 %v2394_v0, %v2116_v1  ;;  %v2108_v59 = vmul.f32 %v2814_v53, %v2092_v19 }
 0xc4c   : > { %v2127_v4 = vadd.f32 %v3542_v28, %v2125_v56  ;;  %v2117_v5 = vmul.f32 %v2393_v62, %v2108_v59 }
 0xc4e   : > { %v2131_v6 = vadd.f32 %v2129_v2, %v2127_v4  ;;  %2133 = vst.msk [vmem:[#allocation2] sm:$0xff] %vm733_vm2, %v2127_v4  ;;  %v2126_v7 = vadd.f32 %v2394_v0, %v2117_v5 }
 0xc50   : > { %2135 = vst.msk [vmem:[#allocation3] sm:$0xff] %vm733_vm2, %v2131_v6  ;;  %v2128_v10 = vadd.f32 %v3546_v52, %v2126_v7  ;;  %2140 = sbr.rel (%p2395_p1) target bundleno = 3160 (0xc58), region = 100 }
 0xc52   : > { %v2132_v11 = vadd.f32 %v2130_v8, %v2128_v10  ;;  %2134 = vst.msk [vmem:[#allocation2 + $0x8] sm:$0xff] %vm733_vm2, %v2128_v10 }
 0xc54   : > { %2136 = vst.msk [vmem:[#allocation3 + $0x8] sm:$0xff] %vm733_vm2, %v2132_v11 }
 0xc55   : > { %v2141_v12 = vmul.f32 0.33333334, %v2131_v6  ;;  %v2142_v28 = vmul.f32 0.33333334, %v2132_v11 }
 0xc57   : > { %2143 = vst.msk [vmem:[#allocation10] sm:$0xff] %vm733_vm2, %v2141_v12  ;;  %2144 = vst.msk [vmem:[#allocation10 + $0x8] sm:$0xff] %vm733_vm2, %v2142_v28 }
 0xc58 PF: > { %p2706_p10 = scmp.eq.s32.totalorder %s3144_s30, 1  ;;  %s2984_s3 = smov [#allocation10]  }
 0xc59   : > { %s2151_s24 = sshll.u32 %s2984_s3, 4  ;;  %s2152_s24 = int_to_ptr.vmem [resolvable:$true] %s2151_s24 }
 0xc5a   : > { %s2899_s11 = scalar_lea.vmem %s2152_s24, 256  ;;  %p2906_p2 = scmp.lt.s32.totalorder %s2152_s24, %s2152_s24 }
 0xc5b   : > { %p2900_p11 = scmp.ne.s32.totalorder %s2152_s24, %s2899_s11  ;;  %p2907_p4 = scmp.lt.s32.totalorder %s2899_s11, %s2899_s11 }
 0xc5d   : > { %p2901_p12 = pnand %p2900_p11, %p2706_p10  ;;  %p2908_p6 = por %p2907_p4, %p2906_p2 }
 0xc5f   : > { %p2902_p3 = pneg %p2901_p12 }
 0xc61   : > { %p2909_p13 = pnand %p2908_p6, %p2902_p3 }
 0xc63   : > { %2912 = shalt.err (!%p2909_p13)
}
 0xc64   : > { %s2985_s2 = smov 128   ;;  %s2986_s26 = smov 8  }
 0xc65   : > { %s3687_s18 = sld [smem:[#allocation25_spill]] }
 0xc6b   : > { %2689 = dma.vmem_to_hbm [thread:$0]  (%p2706_p10), %s2152_s24, 256, %s3687_s18, [#allocation6], %s2985_s2, %s2985_s2, %s2986_s26  }
 0xc6c   : > { %2948 = dma.done.wait (%p2706_p10), [#allocation6], 256  }
 0xc6d   : > { %2950 = vsyncadd (%p2706_p10), [#allocation6], 4294967040 }
 0xc6e PF: > { %s3688_s21 = sld [smem:[#allocation15_spill]]  ;;  %s3691_s18 = smov %s2957_s19 }
 0xc6f   : > { %s3689_s15 = sld [smem:[#allocation14_spill]] }
 0xc70   : > { %s3690_s20 = sld [smem:[#allocation16_spill]] }
 0xc74   : > { %p27_p7 = scmp.ge.s32.totalorder %s3688_s21, 4  }
 0xc75   : > { %s3692_s19 = smov %s3689_s15 }
 0xc76   :  { %29 = sbr.rel (!%p27_p7) target bundleno = 15 (0xf), region = 168 }
 0xc7b   :  { %2167 = vsyncpa [#allocation5], 1 }
 0xc7c   :  { %2169 = vsyncpa [#allocation5 + $0x1], 1 }
 0xc7d   :  { %2170 = vsyncpa [#allocation8], 1 }
 0xc7e   :  { %2172 = vsyncpa [#allocation8 + $0x1], 1 }
 0xc7f   :  { %2173 = vsyncpa [#allocation6], 1 }
 0xc80   :  { %2175 = vsyncpa [#allocation6 + $0x1], 1 }

</bundles_post_ra>
